<compile_context>
chip_gen: v7x
topology: tpu7x:2x2x1
jax: 0.10.0
libtpu: 0.0.40
codegen_flags: <defaults>
</compile_context>

<pallas_src>
import functools

import jax
import jax.numpy as jnp
from jax.experimental import pallas as pl
from jax.experimental.pallas import tpu as pltpu


LANE = 128


def _round_up(x, m):
    return ((x + m - 1) // m) * m


# ----------------------------- in-kernel math helpers ------------------------

def _softplus(x):
    # torch.nn.Softplus: x if x > 20 else log(1 + exp(x))
    xe = jnp.minimum(x, 20.0)
    return jnp.where(x > 20.0, x, jnp.log(1.0 + jnp.exp(xe)))


def _sigmoid(x):
    return 1.0 / (1.0 + jnp.exp(-x))


def _masked_layernorm(x, gamma, beta, real_dim, eps=1e-5):
    """LayerNorm over the first `real_dim` lanes of a lane-padded tensor."""
    dim_p = x.shape[-1]
    lane = jax.lax.broadcasted_iota(jnp.int32, (1, dim_p), 1)
    mask = lane < real_dim
    inv_d = 1.0 / real_dim
    xm = jnp.where(mask, x, 0.0)
    mu = jnp.sum(xm, axis=-1, keepdims=True) * inv_d
    cen = jnp.where(mask, x - mu, 0.0)
    var = jnp.sum(cen * cen, axis=-1, keepdims=True) * inv_d
    # gamma/beta are zero in padded lanes -> output padded lanes are zero.
    return cen * jax.lax.rsqrt(var + eps) * gamma + beta


# ----------------------------- fused Vim kernel ------------------------------

def vim_fused_kernel(
        xp_ref, pw_ref, pb_ref,                                   # patch embed
        ln_g_ref, ln_b_ref, wp_ref, bp_ref, wc_ref, bc_ref,       # per-layer
        wdbc_ref, bdbc_ref, alogt_ref, dskip_ref,                 # per-layer
        hg_ref, hb_ref, wo_ref, bo_ref,                           # head
        out_ref,                                                  # (B, Cp) probs
        act_ref, da_ref, dbu_ref, st_ref,                         # VMEM scratch
        *, dim_real):
    layer = pl.program_id(0)
    n_layers = pl.num_programs(0)

    rows, dim_p = act_ref.shape                  # rows = B*S (token-major rows)
    seq, k_seqs, n_p, _ = da_ref.shape           # k_seqs = 2*B scan sequences
    batch = k_seqs // 2

    # ---- layer 0: patch embedding -> VMEM-resident activation block --------
    @pl.when(layer == 0)
    def _():
        act_ref[...] = (
            jnp.dot(xp_ref[...].astype(jnp.bfloat16), pw_ref[...],
                    preferred_element_type=jnp.float32) + pb_ref[...])

    x = act_ref[...]                                             # (B*S, Dp)

    # ---- VisionEncoderMambaBlock -------------------------------------------
    xn = _masked_layernorm(x, ln_g_ref[...], ln_b_ref[...], dim_real)

    # Shared projection (same nn.Linear feeds the gate and the SSM input).
    z1 = (jnp.dot(xn.astype(jnp.bfloat16), wp_ref[...],
                  preferred_element_type=jnp.float32) + bp_ref[...])
    z = z1 * _sigmoid(z1)                                        # SiLU gate

    # Forward + backward 1x1 conv fused into one (Dp, 2Dp) matmul.
    xc_cat = _softplus(
        jnp.dot(z1.astype(jnp.bfloat16), wc_ref[...],
                preferred_element_type=jnp.float32) + bc_ref[...])
    lane2 = jax.lax.broadcasted_iota(jnp.int32, (1, 2 * dim_p), 1)
    xc_mask = (lane2 < dim_real) | ((lane2 >= dim_p) &
                                    (lane2 < dim_p + dim_real))
    xc_cat = jnp.where(xc_mask, xc_cat, 0.0)      # padded lanes stay exactly 0
    xcf = xc_cat[:, :dim_p]
    xcb = xc_cat[:, dim_p:]

    # Step-major scan rows: row = s*K + k with k = dir*B + b.
    u_g = jnp.stack([xcf.reshape(seq, batch, dim_p),
                     xcb.reshape(seq, batch, dim_p)], axis=1)    # (S,2,B,Dp)
    u2 = u_g.reshape(2 * rows, dim_p)                            # (2BS, Dp)

    # Fused delta|B|C projection: one lane-dense slab, one MXU push.
    dbc = (jnp.dot(u2.astype(jnp.bfloat16), wdbc_ref[...],
                   preferred_element_type=jnp.float32) + bdbc_ref[...])
    delta2 = _softplus(dbc[:, :dim_p])                           # (2BS, Dp)
    b2 = dbc[:, dim_p:dim_p + n_p]                               # (2BS, n)
    c2 = dbc[:, dim_p + n_p:dim_p + 2 * n_p]                     # (2BS, n)

    delta_s = delta2.reshape(seq, k_seqs, dim_p)
    u_s = u2.reshape(seq, k_seqs, dim_p)
    b_s = b2.reshape(seq, k_seqs, n_p)
    c_s = c2.reshape(seq, k_seqs, n_p)

    at = -jnp.exp(alogt_ref[...])                                # (n, Dp)

    # Whole-sequence precompute: exp / broadcasts hoisted out of the scan.
    da_ref[...] = jnp.exp(delta_s[:, :, None, :] * at[None, None, :, :])
    dbu_ref[...] = b_s[:, :, :, None] * (delta_s * u_s)[:, :, None, :]

    # Sequential selective scan: pure FMA recurrence, state carried in vregs.
    def step(s, state):
        state = da_ref[s] * state + dbu_ref[s]                   # (K, n, Dp)
        st_ref[s] = state
        return state

    jax.lax.fori_loop(0, seq, step,
                      jnp.zeros((k_seqs, n_p, dim_p), jnp.float32),
                      unroll=True)

    # y = C . state, vectorized over the whole sequence after the scan.
    yy = jnp.sum(st_ref[...] * c_s[:, :, :, None], axis=2)       # (S, K, Dp)
    ssm_y = (yy[:, :batch, :] + yy[:, batch:, :]).reshape(rows, dim_p)
    ssm_out = ssm_y + (xcf + xcb) * dskip_ref[...]               # + D * u

    act_ref[...] = ssm_out * z + x                               # gate + skip

    # ---- last layer: head (mean -> LN -> linear -> softmax) ----------------
    @pl.when(layer == n_layers - 1)
    def _():
        xm = jnp.mean(act_ref[...].reshape(seq, batch, dim_p), axis=0)  # (B,Dp)
        xh = _masked_layernorm(xm, hg_ref[...], hb_ref[...], dim_real)
        # padded class lanes have bias -1e30 -> exp() == 0 -> exact softmax.
        logits = (jnp.dot(xh.astype(jnp.bfloat16), wo_ref[...],
                          preferred_element_type=jnp.float32) + bo_ref[...])
        m = jnp.max(logits, axis=-1, keepdims=True)
        e = jnp.exp(logits - m)
        out_ref[...] = e / jnp.sum(e, axis=-1, keepdims=True)


# ----------------------------- pallas_call wrapper ---------------------------

def vim_fused(xp, packed, *, batch, seq, dim_real):
    dim_p = packed["patch_w"].shape[1]
    pdp = packed["patch_w"].shape[0]
    lw = packed["layers"]
    depth = lw["wp"].shape[0]
    n_p = lw["alogt"].shape[1]
    cp = packed["head"]["wo"].shape[1]
    rows = batch * seq
    k_seqs = 2 * batch

    const2 = lambda l: (0, 0)        # resident across all layers
    wmap = lambda l: (l, 0, 0)       # per-layer weight slab

    grid_spec = pltpu.PrefetchScalarGridSpec(
        num_scalar_prefetch=0,
        grid=(depth,),
        in_specs=[
            pl.BlockSpec((rows, pdp), const2),             # xp (patches)
            pl.BlockSpec((pdp, dim_p), const2),            # patch_w (bf16)
            pl.BlockSpec((1, dim_p), const2),              # patch_b
            pl.BlockSpec((None, 1, dim_p), wmap),          # ln_g
            pl.BlockSpec((None, 1, dim_p), wmap),          # ln_b
            pl.BlockSpec((None, dim_p, dim_p), wmap),      # wp (bf16)
            pl.BlockSpec((None, 1, dim_p), wmap),          # bp
            pl.BlockSpec((None, dim_p, 2 * dim_p), wmap),  # wc fwd|bwd (bf16)
            pl.BlockSpec((None, 1, 2 * dim_p), wmap),      # bc fwd|bwd
            pl.BlockSpec((None, dim_p, 2 * dim_p), wmap),  # fused delta|B|C (bf16)
            pl.BlockSpec((None, 1, 2 * dim_p), wmap),      # fused bias
            pl.BlockSpec((None, n_p, dim_p), wmap),        # A_log^T
            pl.BlockSpec((None, 1, dim_p), wmap),          # D skip
            pl.BlockSpec((1, dim_p), const2),              # head ln_g
            pl.BlockSpec((1, dim_p), const2),              # head ln_b
            pl.BlockSpec((dim_p, cp), const2),             # head wo (bf16)
            pl.BlockSpec((1, cp), const2),                 # head bo
        ],
        out_specs=pl.BlockSpec((batch, cp), const2),
        scratch_shapes=[
            pltpu.VMEM((rows, dim_p), jnp.float32),                # activations
            pltpu.VMEM((seq, k_seqs, n_p, dim_p), jnp.float32),    # exp(delta*A)
            pltpu.VMEM((seq, k_seqs, n_p, dim_p), jnp.float32),    # delta*B*u
            pltpu.VMEM((seq, k_seqs, n_p, dim_p), jnp.float32),    # state history
        ],
    )

    return pl.pallas_call(
        functools.partial(vim_fused_kernel, dim_real=dim_real),
        out_shape=jax.ShapeDtypeStruct((batch, cp), jnp.float32),
        grid_spec=grid_spec,
        compiler_params=pltpu.CompilerParams(
            dimension_semantics=("arbitrary",),
        ),
    )(xp,
      packed["patch_w"], packed["patch_b"],
      lw["ln_g"], lw["ln_b"], lw["wp"], lw["bp"], lw["wc"], lw["bc"],
      lw["wdbc"], lw["bdbc"], lw["alogt"], lw["dskip"],
      packed["head"]["ln_g"], packed["head"]["ln_b"],
      packed["head"]["wo"], packed["head"]["bo"])


# ----------------------------- host-side layout ------------------------------

def _patchify(x_img, patch_size, pdp):
    """'b c (h p1) (w p2) -> (h w) b (p1 p2 c)' flattened token-major, lane-padded."""
    bsz, c, hgt, wid = x_img.shape
    p = patch_size
    h, w_ = hgt // p, wid // p
    seq = h * w_
    xp = x_img.reshape(bsz, c, h, p, w_, p)
    xp = jnp.transpose(xp, (0, 2, 4, 3, 5, 1))                # b h w p1 p2 c
    xp = xp.reshape(bsz, seq, p * p * c)
    xp = jnp.transpose(xp, (1, 0, 2)).reshape(seq * bsz, p * p * c)
    xp = jnp.pad(xp, ((0, 0), (0, pdp - xp.shape[1])))
    return xp, seq


# ----------------------------- weight packing (padding, folds) ---------------

def _pad2(x, rows, cols):
    return jnp.pad(x, ((0, rows - x.shape[0]), (0, cols - x.shape[1])))


def _pad1(x, n):
    return jnp.pad(x, (0, n - x.shape[0]))


def pack_params(params, *, dim, dt_rank, d_state, num_classes):
    dp = _round_up(dim, LANE)
    n_p = _round_up(d_state, 8)
    cp = _round_up(num_classes, LANE)
    pdim = params["patch_w"].shape[0]
    pdp = _round_up(pdim, LANE)
    assert dp + 2 * n_p <= 2 * dp, "d_state too large for fused delta|B|C slab"

    packed = {
        "patch_w": _pad2(params["patch_w"], pdp, dp).astype(jnp.bfloat16),
        "patch_b": _pad1(params["patch_b"], dp).reshape(1, dp),
        "head": {
            "ln_g": _pad1(params["head"]["ln_g"], dp).reshape(1, dp),
            "ln_b": _pad1(params["head"]["ln_b"], dp).reshape(1, dp),
            "wo": _pad2(params["head"]["wo"], dp, cp).astype(jnp.bfloat16),
            "bo": jnp.pad(params["head"]["bo"], (0, cp - num_classes),
                          constant_values=-1e30).reshape(1, cp),
        },
    }

    def pack_layer(lp):
        # Exact fold: delta = softplus(u @ (Wdbc[:, :dt_rank] @ Wdt) + bdt).
        w_delta = lp["wdbc"][:, :dt_rank] @ lp["wdt"]                # (dim, dim)
        w_b = lp["wdbc"][:, dt_rank:dt_rank + d_state]               # (dim, n)
        w_c = lp["wdbc"][:, dt_rank + d_state:]                      # (dim, n)
        # Fused lane-dense slab: columns [delta (Dp) | B (n_p) | C (n_p) | 0].
        wdbc_f = jnp.zeros((dp, 2 * dp), jnp.float32)
        wdbc_f = wdbc_f.at[:dim, :dim].set(w_delta)
        wdbc_f = wdbc_f.at[:dim, dp:dp + d_state].set(w_b)
        wdbc_f = wdbc_f.at[:dim, dp + n_p:dp + n_p + d_state].set(w_c)
        bdbc = jnp.zeros((1, 2 * dp), jnp.float32).at[0, :dim].set(lp["bdt"])
        return {
            "ln_g": _pad1(lp["ln_g"], dp).reshape(1, dp),
            "ln_b": _pad1(lp["ln_b"], dp).reshape(1, dp),
            "wp": _pad2(lp["wp"], dp, dp).astype(jnp.bfloat16),
            "bp": _pad1(lp["bp"], dp).reshape(1, dp),
            "wc": jnp.concatenate(
                [_pad2(lp["wcf"], dp, dp), _pad2(lp["wcb"], dp, dp)],
                axis=1).astype(jnp.bfloat16),
            "bc": jnp.concatenate(
                [_pad1(lp["bcf"], dp), _pad1(lp["bcb"], dp)]).reshape(1, 2 * dp),
            "wdbc": wdbc_f.astype(jnp.bfloat16),
            "bdbc": bdbc,
            "alogt": _pad2(lp["a_log"].T, n_p, dp),
            "dskip": _pad1(lp["d_skip"], dp).reshape(1, dp),
        }

    layer_list = [pack_layer(lp) for lp in params["layers"]]
    packed["layers"] = {
        k: jnp.stack([l[k] for l in layer_list], axis=0) for k in layer_list[0]
    }
    return packed


# ----------------------------- full forward ----------------------------------

def vim_forward(x_img, params, *, patch_size, num_classes, dim, dt_rank, d_state):
    packed = pack_params(params, dim=dim, dt_rank=dt_rank,
                         d_state=d_state, num_classes=num_classes)
    pdp = packed["patch_w"].shape[0]
    # TODO(synk): nn.Dropout(p=0.1) treated as identity (inference semantics);
    #             cls_token is created but never concatenated in the reference.
    xp, seq = _patchify(x_img, patch_size, pdp)
    probs = vim_fused(xp, packed, batch=x_img.shape[0], seq=seq, dim_real=dim)
    return probs[:, :num_classes]


# ----------------------------- parameter init --------------------------------

def init_params(key, *, dim, dt_rank, dim_inner, d_state, patch_dim,
                num_classes, depth):
    assert dim_inner == dim, "reference SSM requires dim_inner == dim"
    ks = jax.random.split(key, 4 + depth)
    scale = 0.02

    params = {
        "patch_w": scale * jax.random.normal(ks[0], (patch_dim, dim), jnp.float32),
        "patch_b": jnp.zeros((dim,), jnp.float32),
        "head": {
            "ln_g": jnp.ones((dim,), jnp.float32),
            "ln_b": jnp.zeros((dim,), jnp.float32),
            "wo": scale * jax.random.normal(ks[1], (dim, num_classes), jnp.float32),
            "bo": jnp.zeros((num_classes,), jnp.float32),
        },
        "layers": [],
    }

    for li in range(depth):
        lk = jax.random.split(ks[4 + li], 6)
        a_init = jnp.log(
            jnp.tile(jnp.arange(1, d_state + 1, dtype=jnp.float32)[None, :],
                     (dim_inner, 1))
        )
        params["layers"].append({
            "ln_g": jnp.ones((dim,), jnp.float32),
            "ln_b": jnp.zeros((dim,), jnp.float32),
            "wp": scale * jax.random.normal(lk[0], (dim, dim), jnp.float32),
            "bp": jnp.zeros((dim,), jnp.float32),
            "wcf": scale * jax.random.normal(lk[1], (dim, dim), jnp.float32),
            "bcf": jnp.zeros((dim,), jnp.float32),
            "wcb": scale * jax.random.normal(lk[2], (dim, dim), jnp.float32),
            "bcb": jnp.zeros((dim,), jnp.float32),
            "wdbc": scale * jax.random.normal(
                lk[3], (dim, dt_rank + 2 * d_state), jnp.float32),
            "wdt": scale * jax.random.normal(lk[4], (dt_rank, dim_inner), jnp.float32),
            "bdt": jnp.zeros((dim_inner,), jnp.float32),
            "a_log": a_init,                       # (dim_inner, d_state)
            "d_skip": jnp.ones((dim_inner,), jnp.float32),
        })
    return params


# ----------------------------- main -------------------------------------------

if __name__ == "__main__":
    batch = 2
    channels = 3
    image_size = 16
    patch_size = 8
    dim = 32
    dt_rank = 8
    dim_inner = 32
    d_state = 16
    num_classes = 10
    depth = 2
    patch_dim = channels * patch_size * patch_size

    key = jax.random.PRNGKey(0)
    kx, kp = jax.random.split(key)
    x = jax.random.normal(kx, (batch, channels, image_size, image_size), jnp.float32)

    params = init_params(
        kp, dim=dim, dt_rank=dt_rank, dim_inner=dim_inner, d_state=d_state,
        patch_dim=patch_dim, num_classes=num_classes, depth=depth,
    )

    fwd = jax.jit(functools.partial(
        vim_forward, patch_size=patch_size, num_classes=num_classes,
        dim=dim, dt_rank=dt_rank, d_state=d_state))
    out = fwd(x, params)
    out = jax.block_until_ready(out)

    assert out.shape == (batch, num_classes)
    assert bool(jnp.all(jnp.isfinite(out)))
    # probabilities over the real classes sum to 1
    assert jnp.allclose(jnp.sum(out, axis=-1), 1.0, atol=1e-5)
    print("KERNEL_OK")
</pallas_src>

<mosaic_0001>
module attributes {stable_mosaic.version = 11 : i64} {
  func.func @vim_fused_kernel(%arg0: i32, %arg1: memref<8x256xf32, #tpu.memory_space<vmem>>, %arg2: memref<256x128xbf16, #tpu.memory_space<vmem>>, %arg3: memref<1x128xf32, #tpu.memory_space<vmem>>, %arg4: memref<1x1x128xf32, #tpu.memory_space<vmem>>, %arg5: memref<1x1x128xf32, #tpu.memory_space<vmem>>, %arg6: memref<1x128x128xbf16, #tpu.memory_space<vmem>>, %arg7: memref<1x1x128xf32, #tpu.memory_space<vmem>>, %arg8: memref<1x128x256xbf16, #tpu.memory_space<vmem>>, %arg9: memref<1x1x256xf32, #tpu.memory_space<vmem>>, %arg10: memref<1x128x256xbf16, #tpu.memory_space<vmem>>, %arg11: memref<1x1x256xf32, #tpu.memory_space<vmem>>, %arg12: memref<1x16x128xf32, #tpu.memory_space<vmem>>, %arg13: memref<1x1x128xf32, #tpu.memory_space<vmem>>, %arg14: memref<1x128xf32, #tpu.memory_space<vmem>>, %arg15: memref<1x128xf32, #tpu.memory_space<vmem>>, %arg16: memref<128x128xbf16, #tpu.memory_space<vmem>>, %arg17: memref<1x128xf32, #tpu.memory_space<vmem>>, %arg18: memref<2x128xf32, #tpu.memory_space<vmem>>, %arg19: memref<8x128xf32, #tpu.memory_space<vmem>>, %arg20: memref<4x4x16x128xf32, #tpu.memory_space<vmem>>, %arg21: memref<4x4x16x128xf32, #tpu.memory_space<vmem>>, %arg22: memref<4x4x16x128xf32, #tpu.memory_space<vmem>>) attributes {dimension_semantics = [#tpu.dimension_semantics<arbitrary>], iteration_bounds = array<i64: 2>, scalar_prefetch = 0 : i64, scratch_operands = 4 : i64, tpu.core_type = #tpu.core_type<tc>, window_params = [{pipeline_mode = #tpu.pipeline_mode<synchronous>, transform_indices = @transform_0, window_bounds = array<i64: 8, 256>}, {pipeline_mode = #tpu.pipeline_mode<synchronous>, transform_indices = @transform_1, window_bounds = array<i64: 256, 128>}, {pipeline_mode = #tpu.pipeline_mode<synchronous>, transform_indices = @transform_2, window_bounds = array<i64: 1, 128>}, {transform_indices = @transform_3, window_bounds = array<i64: 1, 1, 128>}, {transform_indices = @transform_4, window_bounds = array<i64: 1, 1, 128>}, {transform_indices = @transform_5, window_bounds = array<i64: 1, 128, 128>}, {transform_indices = @transform_6, window_bounds = array<i64: 1, 1, 128>}, {transform_indices = @transform_7, window_bounds = array<i64: 1, 128, 256>}, {transform_indices = @transform_8, window_bounds = array<i64: 1, 1, 256>}, {transform_indices = @transform_9, window_bounds = array<i64: 1, 128, 256>}, {transform_indices = @transform_10, window_bounds = array<i64: 1, 1, 256>}, {transform_indices = @transform_11, window_bounds = array<i64: 1, 16, 128>}, {transform_indices = @transform_12, window_bounds = array<i64: 1, 1, 128>}, {pipeline_mode = #tpu.pipeline_mode<synchronous>, transform_indices = @transform_13, window_bounds = array<i64: 1, 128>}, {pipeline_mode = #tpu.pipeline_mode<synchronous>, transform_indices = @transform_14, window_bounds = array<i64: 1, 128>}, {pipeline_mode = #tpu.pipeline_mode<synchronous>, transform_indices = @transform_15, window_bounds = array<i64: 128, 128>}, {pipeline_mode = #tpu.pipeline_mode<synchronous>, transform_indices = @transform_16, window_bounds = array<i64: 1, 128>}, {pipeline_mode = #tpu.pipeline_mode<synchronous>, transform_indices = @transform_17, window_bounds = array<i64: 2, 128>}]} {
    %c0_i32 = arith.constant 0 : i32
    %0 = arith.cmpi eq, %arg0, %c0_i32 : i32
    %1 = arith.extui %0 : i1 to i32
    %c0_i32_0 = arith.constant 0 : i32
    %2 = arith.cmpi ne, %1, %c0_i32_0 : i32
    scf.if %2 {
      %c0_108 = arith.constant 0 : index
      %c0_109 = arith.constant 0 : index
      %206 = vector.load %arg1[%c0_108, %c0_109] : memref<8x256xf32, #tpu.memory_space<vmem>>, vector<8x256xf32>
      %207 = arith.truncf %206 : vector<8x256xf32> to vector<8x256xbf16>
      %c0_110 = arith.constant 0 : index
      %c0_111 = arith.constant 0 : index
      %208 = vector.load %arg2[%c0_110, %c0_111] : memref<256x128xbf16, #tpu.memory_space<vmem>>, vector<256x128xbf16>
      %cst_112 = arith.constant dense<0.000000e+00> : vector<8x128xf32>
      %209 = tpu.matmul %207, %208, %cst_112 {dimension_numbers = #tpu.dot_dimension_numbers<[1], [0], [0], [1], [0, 0, 1, 1], [], []>} : vector<8x256xbf16>, vector<256x128xbf16>, vector<8x128xf32> -> vector<8x128xf32>
      %c0_113 = arith.constant 0 : index
      %c0_114 = arith.constant 0 : index
      %210 = vector.load %arg3[%c0_113, %c0_114] : memref<1x128xf32, #tpu.memory_space<vmem>>, vector<1x128xf32>
      %211 = vector.broadcast %210 : vector<1x128xf32> to vector<8x128xf32>
      %212 = arith.addf %209, %211 : vector<8x128xf32>
      %c0_115 = arith.constant 0 : index
      %c0_116 = arith.constant 0 : index
      %213 = vector.load %arg19[%c0_115, %c0_116] : memref<8x128xf32, #tpu.memory_space<vmem>>, vector<8x128xf32>
      tpu.vector_store %arg19[%c0_115, %c0_116], %212 {strides = array<i32>} : memref<8x128xf32, #tpu.memory_space<vmem>>, vector<8x128xf32>,
    } else {
    }
    %c0 = arith.constant 0 : index
    %c0_1 = arith.constant 0 : index
    %3 = vector.load %arg19[%c0, %c0_1] : memref<8x128xf32, #tpu.memory_space<vmem>>, vector<8x128xf32>
    %c0_2 = arith.constant 0 : index
    %c0_3 = arith.constant 0 : index
    %c0_4 = arith.constant 0 : index
    %4 = vector.load %arg4[%c0_2, %c0_3, %c0_4] : memref<1x1x128xf32, #tpu.memory_space<vmem>>, vector<1x1x128xf32>
    %5 = vector.shape_cast %4 : vector<1x1x128xf32> to vector<1x128xf32>
    %c0_5 = arith.constant 0 : index
    %c0_6 = arith.constant 0 : index
    %c0_7 = arith.constant 0 : index
    %6 = vector.load %arg5[%c0_5, %c0_6, %c0_7] : memref<1x1x128xf32, #tpu.memory_space<vmem>>, vector<1x1x128xf32>
    %7 = vector.shape_cast %6 : vector<1x1x128xf32> to vector<1x128xf32>
    %8 = tpu.iota {dimensions = array<i32: 1>} : vector<1x128xi32>
    %c32_i32 = arith.constant 32 : i32
    %9 = vector.broadcast %c32_i32 : i32 to vector<1x128xi32>
    %10 = arith.cmpi slt, %8, %9 : vector<1x128xi32>
    %cst = arith.constant 0.000000e+00 : f32
    %11 = vector.shape_cast %10 : vector<1x128xi1> to vector<1x128xi1>
    %12 = vector.broadcast %11 : vector<1x128xi1> to vector<8x128xi1>
    %13 = vector.broadcast %cst : f32 to vector<8x128xf32>
    %14 = arith.select %12, %3, %13 : vector<8x128xi1>, vector<8x128xf32>
    %cst_8 = arith.constant dense<0.000000e+00> : vector<8xf32>
    %15 = vector.multi_reduction <add>, %14, %cst_8 [1] : vector<8x128xf32> to vector<8xf32>
    %16 = vector.shape_cast %15 : vector<8xf32> to vector<8x1xf32>
    %cst_9 = arith.constant 3.125000e-02 : f32
    %17 = vector.broadcast %cst_9 : f32 to vector<8x1xf32>
    %18 = arith.mulf %16, %17 : vector<8x1xf32>
    %19 = vector.broadcast %18 : vector<8x1xf32> to vector<8x128xf32>
    %20 = arith.subf %3, %19 : vector<8x128xf32>
    %cst_10 = arith.constant 0.000000e+00 : f32
    %21 = vector.shape_cast %10 : vector<1x128xi1> to vector<1x128xi1>
    %22 = vector.broadcast %21 : vector<1x128xi1> to vector<8x128xi1>
    %23 = vector.broadcast %cst_10 : f32 to vector<8x128xf32>
    %24 = arith.select %22, %20, %23 : vector<8x128xi1>, vector<8x128xf32>
    %25 = arith.mulf %24, %24 : vector<8x128xf32>
    %cst_11 = arith.constant dense<0.000000e+00> : vector<8xf32>
    %26 = vector.multi_reduction <add>, %25, %cst_11 [1] : vector<8x128xf32> to vector<8xf32>
    %27 = vector.shape_cast %26 : vector<8xf32> to vector<8x1xf32>
    %cst_12 = arith.constant 3.125000e-02 : f32
    %28 = vector.broadcast %cst_12 : f32 to vector<8x1xf32>
    %29 = arith.mulf %27, %28 : vector<8x1xf32>
    %cst_13 = arith.constant 9.99999974E-6 : f32
    %30 = vector.broadcast %cst_13 : f32 to vector<8x1xf32>
    %31 = arith.addf %29, %30 : vector<8x1xf32>
    %32 = math.rsqrt %31 : vector<8x1xf32>
    %33 = vector.broadcast %32 : vector<8x1xf32> to vector<8x128xf32>
    %34 = arith.mulf %24, %33 : vector<8x128xf32>
    %35 = vector.broadcast %5 : vector<1x128xf32> to vector<8x128xf32>
    %36 = arith.mulf %34, %35 : vector<8x128xf32>
    %37 = vector.broadcast %7 : vector<1x128xf32> to vector<8x128xf32>
    %38 = arith.addf %36, %37 : vector<8x128xf32>
    %39 = arith.truncf %38 : vector<8x128xf32> to vector<8x128xbf16>
    %c0_14 = arith.constant 0 : index
    %c0_15 = arith.constant 0 : index
    %c0_16 = arith.constant 0 : index
    %40 = vector.load %arg6[%c0_14, %c0_15, %c0_16] : memref<1x128x128xbf16, #tpu.memory_space<vmem>>, vector<1x128x128xbf16>
    %41 = vector.shape_cast %40 : vector<1x128x128xbf16> to vector<128x128xbf16>
    %cst_17 = arith.constant dense<0.000000e+00> : vector<8x128xf32>
    %42 = tpu.matmul %39, %41, %cst_17 {dimension_numbers = #tpu.dot_dimension_numbers<[1], [0], [0], [1], [0, 0, 1, 1], [], []>} : vector<8x128xbf16>, vector<128x128xbf16>, vector<8x128xf32> -> vector<8x128xf32>
    %c0_18 = arith.constant 0 : index
    %c0_19 = arith.constant 0 : index
    %c0_20 = arith.constant 0 : index
    %43 = vector.load %arg7[%c0_18, %c0_19, %c0_20] : memref<1x1x128xf32, #tpu.memory_space<vmem>>, vector<1x1x128xf32>
    %44 = vector.shape_cast %43 : vector<1x1x128xf32> to vector<1x128xf32>
    %45 = vector.broadcast %44 : vector<1x128xf32> to vector<8x128xf32>
    %46 = arith.addf %42, %45 : vector<8x128xf32>
    %cst_21 = arith.constant 0.000000e+00 : f32
    %47 = vector.broadcast %cst_21 : f32 to vector<8x128xf32>
    %48 = arith.subf %47, %46 : vector<8x128xf32>
    %49 = math.exp %48 : vector<8x128xf32>
    %cst_22 = arith.constant 1.000000e+00 : f32
    %50 = vector.broadcast %cst_22 : f32 to vector<8x128xf32>
    %51 = arith.addf %50, %49 : vector<8x128xf32>
    %cst_23 = arith.constant 1.000000e+00 : f32
    %52 = vector.broadcast %cst_23 : f32 to vector<8x128xf32>
    %53 = arith.divf %52, %51 : vector<8x128xf32>
    %54 = arith.mulf %46, %53 : vector<8x128xf32>
    %55 = arith.truncf %46 : vector<8x128xf32> to vector<8x128xbf16>
    %c0_24 = arith.constant 0 : index
    %c0_25 = arith.constant 0 : index
    %c0_26 = arith.constant 0 : index
    %56 = vector.load %arg8[%c0_24, %c0_25, %c0_26] : memref<1x128x256xbf16, #tpu.memory_space<vmem>>, vector<1x128x256xbf16>
    %57 = vector.shape_cast %56 : vector<1x128x256xbf16> to vector<128x256xbf16>
    %cst_27 = arith.constant dense<0.000000e+00> : vector<8x256xf32>
    %58 = tpu.matmul %55, %57, %cst_27 {dimension_numbers = #tpu.dot_dimension_numbers<[1], [0], [0], [1], [0, 0, 1, 1], [], []>} : vector<8x128xbf16>, vector<128x256xbf16>, vector<8x256xf32> -> vector<8x256xf32>
    %c0_28 = arith.constant 0 : index
    %c0_29 = arith.constant 0 : index
    %c0_30 = arith.constant 0 : index
    %59 = vector.load %arg9[%c0_28, %c0_29, %c0_30] : memref<1x1x256xf32, #tpu.memory_space<vmem>>, vector<1x1x256xf32>
    %60 = vector.shape_cast %59 : vector<1x1x256xf32> to vector<1x256xf32>
    %61 = vector.broadcast %60 : vector<1x256xf32> to vector<8x256xf32>
    %62 = arith.addf %58, %61 : vector<8x256xf32>
    %cst_31 = arith.constant 2.000000e+01 : f32
    %63 = vector.broadcast %cst_31 : f32 to vector<8x256xf32>
    %64 = arith.minimumf %62, %63 : vector<8x256xf32>
    %cst_32 = arith.constant 2.000000e+01 : f32
    %65 = vector.broadcast %cst_32 : f32 to vector<8x256xf32>
    %66 = arith.cmpf ogt, %62, %65 : vector<8x256xf32>
    %67 = math.exp %64 : vector<8x256xf32>
    %cst_33 = arith.constant 1.000000e+00 : f32
    %68 = vector.broadcast %cst_33 : f32 to vector<8x256xf32>
    %69 = arith.addf %68, %67 : vector<8x256xf32>
    %70 = math.log %69 : vector<8x256xf32>
    %71 = arith.select %66, %62, %70 : vector<8x256xi1>, vector<8x256xf32>
    %72 = tpu.iota {dimensions = array<i32: 1>} : vector<1x256xi32>
    %c32_i32_34 = arith.constant 32 : i32
    %73 = vector.broadcast %c32_i32_34 : i32 to vector<1x256xi32>
    %74 = arith.cmpi slt, %72, %73 : vector<1x256xi32>
    %c128_i32 = arith.constant 128 : i32
    %75 = vector.broadcast %c128_i32 : i32 to vector<1x256xi32>
    %76 = arith.cmpi sge, %72, %75 : vector<1x256xi32>
    %c160_i32 = arith.constant 160 : i32
    %77 = vector.broadcast %c160_i32 : i32 to vector<1x256xi32>
    %78 = arith.cmpi slt, %72, %77 : vector<1x256xi32>
    %79 = arith.andi %76, %78 : vector<1x256xi1>
    %80 = arith.ori %74, %79 : vector<1x256xi1>
    %cst_35 = arith.constant 0.000000e+00 : f32
    %81 = vector.shape_cast %80 : vector<1x256xi1> to vector<1x256xi1>
    %82 = vector.broadcast %81 : vector<1x256xi1> to vector<8x256xi1>
    %83 = vector.broadcast %cst_35 : f32 to vector<8x256xf32>
    %84 = arith.select %82, %71, %83 : vector<8x256xi1>, vector<8x256xf32>
    %85 = vector.extract_strided_slice %84 {offsets = [0, 0], sizes = [8, 128], strides = [1, 1]} : vector<8x256xf32> to vector<8x128xf32>
    %86 = vector.extract_strided_slice %84 {offsets = [0, 128], sizes = [8, 128], strides = [1, 1]} : vector<8x256xf32> to vector<8x128xf32>
    %87 = vector.shape_cast %85 : vector<8x128xf32> to vector<4x2x128xf32>
    %88 = vector.shape_cast %86 : vector<8x128xf32> to vector<4x2x128xf32>
    %89 = vector.shape_cast %87 : vector<4x2x128xf32> to vector<4x1x2x128xf32>
    %90 = vector.shape_cast %88 : vector<4x2x128xf32> to vector<4x1x2x128xf32>
    %91 = tpu.concatenate %89, %90 in 1 : vector<4x1x2x128xf32>, vector<4x1x2x128xf32> -> vector<4x2x2x128xf32>
    %92 = vector.shape_cast %91 : vector<4x2x2x128xf32> to vector<16x128xf32>
    %93 = arith.truncf %92 : vector<16x128xf32> to vector<16x128xbf16>
    %c0_36 = arith.constant 0 : index
    %c0_37 = arith.constant 0 : index
    %c0_38 = arith.constant 0 : index
    %94 = vector.load %arg10[%c0_36, %c0_37, %c0_38] : memref<1x128x256xbf16, #tpu.memory_space<vmem>>, vector<1x128x256xbf16>
    %95 = vector.shape_cast %94 : vector<1x128x256xbf16> to vector<128x256xbf16>
    %cst_39 = arith.constant dense<0.000000e+00> : vector<16x256xf32>
    %96 = tpu.matmul %93, %95, %cst_39 {dimension_numbers = #tpu.dot_dimension_numbers<[1], [0], [0], [1], [0, 0, 1, 1], [], []>} : vector<16x128xbf16>, vector<128x256xbf16>, vector<16x256xf32> -> vector<16x256xf32>
    %c0_40 = arith.constant 0 : index
    %c0_41 = arith.constant 0 : index
    %c0_42 = arith.constant 0 : index
    %97 = vector.load %arg11[%c0_40, %c0_41, %c0_42] : memref<1x1x256xf32, #tpu.memory_space<vmem>>, vector<1x1x256xf32>
    %98 = vector.shape_cast %97 : vector<1x1x256xf32> to vector<1x256xf32>
    %99 = vector.broadcast %98 : vector<1x256xf32> to vector<16x256xf32>
    %100 = arith.addf %96, %99 : vector<16x256xf32>
    %101 = vector.extract_strided_slice %100 {offsets = [0, 0], sizes = [16, 128], strides = [1, 1]} : vector<16x256xf32> to vector<16x128xf32>
    %cst_43 = arith.constant 2.000000e+01 : f32
    %102 = vector.broadcast %cst_43 : f32 to vector<16x128xf32>
    %103 = arith.minimumf %101, %102 : vector<16x128xf32>
    %cst_44 = arith.constant 2.000000e+01 : f32
    %104 = vector.broadcast %cst_44 : f32 to vector<16x128xf32>
    %105 = arith.cmpf ogt, %101, %104 : vector<16x128xf32>
    %106 = math.exp %103 : vector<16x128xf32>
    %cst_45 = arith.constant 1.000000e+00 : f32
    %107 = vector.broadcast %cst_45 : f32 to vector<16x128xf32>
    %108 = arith.addf %107, %106 : vector<16x128xf32>
    %109 = math.log %108 : vector<16x128xf32>
    %110 = arith.select %105, %101, %109 : vector<16x128xi1>, vector<16x128xf32>
    %111 = vector.extract_strided_slice %100 {offsets = [0, 128], sizes = [16, 16], strides = [1, 1]} : vector<16x256xf32> to vector<16x16xf32>
    %112 = vector.extract_strided_slice %100 {offsets = [0, 144], sizes = [16, 16], strides = [1, 1]} : vector<16x256xf32> to vector<16x16xf32>
    %113 = vector.shape_cast %110 : vector<16x128xf32> to vector<4x4x128xf32>
    %114 = vector.shape_cast %92 : vector<16x128xf32> to vector<4x4x128xf32>
    %115 = vector.shape_cast %111 : vector<16x16xf32> to vector<4x4x16xf32>
    %116 = vector.shape_cast %112 : vector<16x16xf32> to vector<4x4x16xf32>
    %c0_46 = arith.constant 0 : index
    %c0_47 = arith.constant 0 : index
    %c0_48 = arith.constant 0 : index
    %117 = vector.load %arg12[%c0_46, %c0_47, %c0_48] : memref<1x16x128xf32, #tpu.memory_space<vmem>>, vector<1x16x128xf32>
    %118 = vector.shape_cast %117 : vector<1x16x128xf32> to vector<16x128xf32>
    %119 = math.exp %118 : vector<16x128xf32>
    %cst_49 = arith.constant 0.000000e+00 : f32
    %120 = vector.broadcast %cst_49 : f32 to vector<16x128xf32>
    %121 = arith.subf %120, %119 : vector<16x128xf32>
    %122 = vector.shape_cast %113 : vector<4x4x128xf32> to vector<4x4x1x128xf32>
    %123 = vector.shape_cast %121 : vector<16x128xf32> to vector<1x1x16x128xf32>
    %124 = vector.broadcast %122 : vector<4x4x1x128xf32> to vector<4x4x16x128xf32>
    %125 = vector.broadcast %123 : vector<1x1x16x128xf32> to vector<4x4x16x128xf32>
    %126 = arith.mulf %124, %125 : vector<4x4x16x128xf32>
    %127 = math.exp %126 : vector<4x4x16x128xf32>
    %c0_50 = arith.constant 0 : index
    %c0_51 = arith.constant 0 : index
    %c0_52 = arith.constant 0 : index
    %c0_53 = arith.constant 0 : index
    %128 = vector.load %arg20[%c0_50, %c0_51, %c0_52, %c0_53] : memref<4x4x16x128xf32, #tpu.memory_space<vmem>>, vector<4x4x16x128xf32>
    tpu.vector_store %arg20[%c0_50, %c0_51, %c0_52, %c0_53], %127 {strides = array<i32>} : memref<4x4x16x128xf32, #tpu.memory_space<vmem>>, vector<4x4x16x128xf32>,
    %129 = vector.shape_cast %115 : vector<4x4x16xf32> to vector<4x4x16x1xf32>
    %130 = arith.mulf %113, %114 : vector<4x4x128xf32>
    %131 = vector.shape_cast %130 : vector<4x4x128xf32> to vector<4x4x1x128xf32>
    %132 = vector.broadcast %129 : vector<4x4x16x1xf32> to vector<4x4x16x128xf32>
    %133 = vector.broadcast %131 : vector<4x4x1x128xf32> to vector<4x4x16x128xf32>
    %134 = arith.mulf %132, %133 : vector<4x4x16x128xf32>
    %c0_54 = arith.constant 0 : index
    %c0_55 = arith.constant 0 : index
    %c0_56 = arith.constant 0 : index
    %c0_57 = arith.constant 0 : index
    %135 = vector.load %arg21[%c0_54, %c0_55, %c0_56, %c0_57] : memref<4x4x16x128xf32, #tpu.memory_space<vmem>>, vector<4x4x16x128xf32>
    tpu.vector_store %arg21[%c0_54, %c0_55, %c0_56, %c0_57], %134 {strides = array<i32>} : memref<4x4x16x128xf32, #tpu.memory_space<vmem>>, vector<4x4x16x128xf32>,
    %cst_58 = arith.constant 0.000000e+00 : f32
    %136 = vector.broadcast %cst_58 : f32 to vector<4x16x128xf32>
    %c0_i32_59 = arith.constant 0 : i32
    %137 = arith.index_cast %c0_i32_59 : i32 to index
    %c0_60 = arith.constant 0 : index
    %c0_61 = arith.constant 0 : index
    %c0_62 = arith.constant 0 : index
    %138 = vector.load %arg20[%137, %c0_60, %c0_61, %c0_62] : memref<4x4x16x128xf32, #tpu.memory_space<vmem>>, vector<1x4x16x128xf32>
    %139 = vector.shape_cast %138 : vector<1x4x16x128xf32> to vector<4x16x128xf32>
    %140 = arith.mulf %139, %136 : vector<4x16x128xf32>
    %141 = arith.index_cast %c0_i32_59 : i32 to index
    %c0_63 = arith.constant 0 : index
    %c0_64 = arith.constant 0 : index
    %c0_65 = arith.constant 0 : index
    %142 = vector.load %arg21[%141, %c0_63, %c0_64, %c0_65] : memref<4x4x16x128xf32, #tpu.memory_space<vmem>>, vector<1x4x16x128xf32>
    %143 = vector.shape_cast %142 : vector<1x4x16x128xf32> to vector<4x16x128xf32>
    %144 = arith.addf %140, %143 : vector<4x16x128xf32>
    %145 = arith.index_cast %c0_i32_59 : i32 to index
    %c0_66 = arith.constant 0 : index
    %c0_67 = arith.constant 0 : index
    %c0_68 = arith.constant 0 : index
    %146 = vector.load %arg22[%145, %c0_66, %c0_67, %c0_68] : memref<4x4x16x128xf32, #tpu.memory_space<vmem>>, vector<1x4x16x128xf32>
    %147 = vector.shape_cast %146 : vector<1x4x16x128xf32> to vector<4x16x128xf32>
    %148 = vector.shape_cast %144 : vector<4x16x128xf32> to vector<1x4x16x128xf32>
    tpu.vector_store %arg22[%145, %c0_66, %c0_67, %c0_68], %148 {strides = array<i32>} : memref<4x4x16x128xf32, #tpu.memory_space<vmem>>, vector<1x4x16x128xf32>,
    %c1_i32 = arith.constant 1 : i32
    %149 = arith.index_cast %c1_i32 : i32 to index
    %c0_69 = arith.constant 0 : index
    %c0_70 = arith.constant 0 : index
    %c0_71 = arith.constant 0 : index
    %150 = vector.load %arg20[%149, %c0_69, %c0_70, %c0_71] : memref<4x4x16x128xf32, #tpu.memory_space<vmem>>, vector<1x4x16x128xf32>
    %151 = vector.shape_cast %150 : vector<1x4x16x128xf32> to vector<4x16x128xf32>
    %152 = arith.mulf %151, %144 : vector<4x16x128xf32>
    %153 = arith.index_cast %c1_i32 : i32 to index
    %c0_72 = arith.constant 0 : index
    %c0_73 = arith.constant 0 : index
    %c0_74 = arith.constant 0 : index
    %154 = vector.load %arg21[%153, %c0_72, %c0_73, %c0_74] : memref<4x4x16x128xf32, #tpu.memory_space<vmem>>, vector<1x4x16x128xf32>
    %155 = vector.shape_cast %154 : vector<1x4x16x128xf32> to vector<4x16x128xf32>
    %156 = arith.addf %152, %155 : vector<4x16x128xf32>
    %157 = arith.index_cast %c1_i32 : i32 to index
    %c0_75 = arith.constant 0 : index
    %c0_76 = arith.constant 0 : index
    %c0_77 = arith.constant 0 : index
    %158 = vector.load %arg22[%157, %c0_75, %c0_76, %c0_77] : memref<4x4x16x128xf32, #tpu.memory_space<vmem>>, vector<1x4x16x128xf32>
    %159 = vector.shape_cast %158 : vector<1x4x16x128xf32> to vector<4x16x128xf32>
    %160 = vector.shape_cast %156 : vector<4x16x128xf32> to vector<1x4x16x128xf32>
    tpu.vector_store %arg22[%157, %c0_75, %c0_76, %c0_77], %160 {strides = array<i32>} : memref<4x4x16x128xf32, #tpu.memory_space<vmem>>, vector<1x4x16x128xf32>,
    %c2_i32 = arith.constant 2 : i32
    %161 = arith.index_cast %c2_i32 : i32 to index
    %c0_78 = arith.constant 0 : index
    %c0_79 = arith.constant 0 : index
    %c0_80 = arith.constant 0 : index
    %162 = vector.load %arg20[%161, %c0_78, %c0_79, %c0_80] : memref<4x4x16x128xf32, #tpu.memory_space<vmem>>, vector<1x4x16x128xf32>
    %163 = vector.shape_cast %162 : vector<1x4x16x128xf32> to vector<4x16x128xf32>
    %164 = arith.mulf %163, %156 : vector<4x16x128xf32>
    %165 = arith.index_cast %c2_i32 : i32 to index
    %c0_81 = arith.constant 0 : index
    %c0_82 = arith.constant 0 : index
    %c0_83 = arith.constant 0 : index
    %166 = vector.load %arg21[%165, %c0_81, %c0_82, %c0_83] : memref<4x4x16x128xf32, #tpu.memory_space<vmem>>, vector<1x4x16x128xf32>
    %167 = vector.shape_cast %166 : vector<1x4x16x128xf32> to vector<4x16x128xf32>
    %168 = arith.addf %164, %167 : vector<4x16x128xf32>
    %169 = arith.index_cast %c2_i32 : i32 to index
    %c0_84 = arith.constant 0 : index
    %c0_85 = arith.constant 0 : index
    %c0_86 = arith.constant 0 : index
    %170 = vector.load %arg22[%169, %c0_84, %c0_85, %c0_86] : memref<4x4x16x128xf32, #tpu.memory_space<vmem>>, vector<1x4x16x128xf32>
    %171 = vector.shape_cast %170 : vector<1x4x16x128xf32> to vector<4x16x128xf32>
    %172 = vector.shape_cast %168 : vector<4x16x128xf32> to vector<1x4x16x128xf32>
    tpu.vector_store %arg22[%169, %c0_84, %c0_85, %c0_86], %172 {strides = array<i32>} : memref<4x4x16x128xf32, #tpu.memory_space<vmem>>, vector<1x4x16x128xf32>,
    %c3_i32 = arith.constant 3 : i32
    %173 = arith.index_cast %c3_i32 : i32 to index
    %c0_87 = arith.constant 0 : index
    %c0_88 = arith.constant 0 : index
    %c0_89 = arith.constant 0 : index
    %174 = vector.load %arg20[%173, %c0_87, %c0_88, %c0_89] : memref<4x4x16x128xf32, #tpu.memory_space<vmem>>, vector<1x4x16x128xf32>
    %175 = vector.shape_cast %174 : vector<1x4x16x128xf32> to vector<4x16x128xf32>
    %176 = arith.mulf %175, %168 : vector<4x16x128xf32>
    %177 = arith.index_cast %c3_i32 : i32 to index
    %c0_90 = arith.constant 0 : index
    %c0_91 = arith.constant 0 : index
    %c0_92 = arith.constant 0 : index
    %178 = vector.load %arg21[%177, %c0_90, %c0_91, %c0_92] : memref<4x4x16x128xf32, #tpu.memory_space<vmem>>, vector<1x4x16x128xf32>
    %179 = vector.shape_cast %178 : vector<1x4x16x128xf32> to vector<4x16x128xf32>
    %180 = arith.addf %176, %179 : vector<4x16x128xf32>
    %181 = arith.index_cast %c3_i32 : i32 to index
    %c0_93 = arith.constant 0 : index
    %c0_94 = arith.constant 0 : index
    %c0_95 = arith.constant 0 : index
    %182 = vector.load %arg22[%181, %c0_93, %c0_94, %c0_95] : memref<4x4x16x128xf32, #tpu.memory_space<vmem>>, vector<1x4x16x128xf32>
    %183 = vector.shape_cast %182 : vector<1x4x16x128xf32> to vector<4x16x128xf32>
    %184 = vector.shape_cast %180 : vector<4x16x128xf32> to vector<1x4x16x128xf32>
    tpu.vector_store %arg22[%181, %c0_93, %c0_94, %c0_95], %184 {strides = array<i32>} : memref<4x4x16x128xf32, #tpu.memory_space<vmem>>, vector<1x4x16x128xf32>,
    %c4_i32 = arith.constant 4 : i32
    %c0_96 = arith.constant 0 : index
    %c0_97 = arith.constant 0 : index
    %c0_98 = arith.constant 0 : index
    %c0_99 = arith.constant 0 : index
    %185 = vector.load %arg22[%c0_96, %c0_97, %c0_98, %c0_99] : memref<4x4x16x128xf32, #tpu.memory_space<vmem>>, vector<4x4x16x128xf32>
    %186 = vector.shape_cast %116 : vector<4x4x16xf32> to vector<4x4x16x1xf32>
    %187 = vector.broadcast %186 : vector<4x4x16x1xf32> to vector<4x4x16x128xf32>
    %188 = arith.mulf %185, %187 : vector<4x4x16x128xf32>
    %cst_100 = arith.constant dense<0.000000e+00> : vector<4x4x128xf32>
    %189 = vector.multi_reduction <add>, %188, %cst_100 [2] : vector<4x4x16x128xf32> to vector<4x4x128xf32>
    %190 = vector.extract_strided_slice %189 {offsets = [0, 0, 0], sizes = [4, 2, 128], strides = [1, 1, 1]} : vector<4x4x128xf32> to vector<4x2x128xf32>
    %191 = vector.extract_strided_slice %189 {offsets = [0, 2, 0], sizes = [4, 2, 128], strides = [1, 1, 1]} : vector<4x4x128xf32> to vector<4x2x128xf32>
    %192 = arith.addf %190, %191 : vector<4x2x128xf32>
    %193 = vector.shape_cast %192 : vector<4x2x128xf32> to vector<8x128xf32>
    %194 = arith.addf %85, %86 : vector<8x128xf32>
    %c0_101 = arith.constant 0 : index
    %c0_102 = arith.constant 0 : index
    %c0_103 = arith.constant 0 : index
    %195 = vector.load %arg13[%c0_101, %c0_102, %c0_103] : memref<1x1x128xf32, #tpu.memory_space<vmem>>, vector<1x1x128xf32>
    %196 = vector.shape_cast %195 : vector<1x1x128xf32> to vector<1x128xf32>
    %197 = vector.broadcast %196 : vector<1x128xf32> to vector<8x128xf32>
    %198 = arith.mulf %194, %197 : vector<8x128xf32>
    %199 = arith.addf %193, %198 : vector<8x128xf32>
    %200 = arith.mulf %199, %54 : vector<8x128xf32>
    %201 = arith.addf %200, %3 : vector<8x128xf32>
    %c0_104 = arith.constant 0 : index
    %c0_105 = arith.constant 0 : index
    %202 = vector.load %arg19[%c0_104, %c0_105] : memref<8x128xf32, #tpu.memory_space<vmem>>, vector<8x128xf32>
    tpu.vector_store %arg19[%c0_104, %c0_105], %201 {strides = array<i32>} : memref<8x128xf32, #tpu.memory_space<vmem>>, vector<8x128xf32>,
    %c1_i32_106 = arith.constant 1 : i32
    %203 = arith.cmpi eq, %arg0, %c1_i32_106 : i32
    %204 = arith.extui %203 : i1 to i32
    %c0_i32_107 = arith.constant 0 : i32
    %205 = arith.cmpi ne, %204, %c0_i32_107 : i32
    scf.if %205 {
      %c0_108 = arith.constant 0 : index
      %c0_109 = arith.constant 0 : index
      %206 = vector.load %arg19[%c0_108, %c0_109] : memref<8x128xf32, #tpu.memory_space<vmem>>, vector<8x128xf32>
      %207 = vector.shape_cast %206 : vector<8x128xf32> to vector<4x2x128xf32>
      %cst_110 = arith.constant dense<0.000000e+00> : vector<2x128xf32>
      %208 = vector.multi_reduction <add>, %207, %cst_110 [0] : vector<4x2x128xf32> to vector<2x128xf32>
      %cst_111 = arith.constant 4.000000e+00 : f32
      %209 = vector.broadcast %cst_111 : f32 to vector<2x128xf32>
      %210 = arith.divf %208, %209 : vector<2x128xf32>
      %c0_112 = arith.constant 0 : index
      %c0_113 = arith.constant 0 : index
      %211 = vector.load %arg14[%c0_112, %c0_113] : memref<1x128xf32, #tpu.memory_space<vmem>>, vector<1x128xf32>
      %c0_114 = arith.constant 0 : index
      %c0_115 = arith.constant 0 : index
      %212 = vector.load %arg15[%c0_114, %c0_115] : memref<1x128xf32, #tpu.memory_space<vmem>>, vector<1x128xf32>
      %213 = tpu.iota {dimensions = array<i32: 1>} : vector<1x128xi32>
      %c32_i32_116 = arith.constant 32 : i32
      %214 = vector.broadcast %c32_i32_116 : i32 to vector<1x128xi32>
      %215 = arith.cmpi slt, %213, %214 : vector<1x128xi32>
      %cst_117 = arith.constant 0.000000e+00 : f32
      %216 = vector.shape_cast %215 : vector<1x128xi1> to vector<1x128xi1>
      %217 = vector.broadcast %216 : vector<1x128xi1> to vector<2x128xi1>
      %218 = vector.broadcast %cst_117 : f32 to vector<2x128xf32>
      %219 = arith.select %217, %210, %218 : vector<2x128xi1>, vector<2x128xf32>
      %cst_118 = arith.constant dense<0.000000e+00> : vector<2xf32>
      %220 = vector.multi_reduction <add>, %219, %cst_118 [1] : vector<2x128xf32> to vector<2xf32>
      %221 = vector.shape_cast %220 : vector<2xf32> to vector<2x1xf32>
      %cst_119 = arith.constant 3.125000e-02 : f32
      %222 = vector.broadcast %cst_119 : f32 to vector<2x1xf32>
      %223 = arith.mulf %221, %222 : vector<2x1xf32>
      %224 = vector.broadcast %223 : vector<2x1xf32> to vector<2x128xf32>
      %225 = arith.subf %210, %224 : vector<2x128xf32>
      %cst_120 = arith.constant 0.000000e+00 : f32
      %226 = vector.shape_cast %215 : vector<1x128xi1> to vector<1x128xi1>
      %227 = vector.broadcast %226 : vector<1x128xi1> to vector<2x128xi1>
      %228 = vector.broadcast %cst_120 : f32 to vector<2x128xf32>
      %229 = arith.select %227, %225, %228 : vector<2x128xi1>, vector<2x128xf32>
      %230 = arith.mulf %229, %229 : vector<2x128xf32>
      %cst_121 = arith.constant dense<0.000000e+00> : vector<2xf32>
      %231 = vector.multi_reduction <add>, %230, %cst_121 [1] : vector<2x128xf32> to vector<2xf32>
      %232 = vector.shape_cast %231 : vector<2xf32> to vector<2x1xf32>
      %cst_122 = arith.constant 3.125000e-02 : f32
      %233 = vector.broadcast %cst_122 : f32 to vector<2x1xf32>
      %234 = arith.mulf %232, %233 : vector<2x1xf32>
      %cst_123 = arith.constant 9.99999974E-6 : f32
      %235 = vector.broadcast %cst_123 : f32 to vector<2x1xf32>
      %236 = arith.addf %234, %235 : vector<2x1xf32>
      %237 = math.rsqrt %236 : vector<2x1xf32>
      %238 = vector.broadcast %237 : vector<2x1xf32> to vector<2x128xf32>
      %239 = arith.mulf %229, %238 : vector<2x128xf32>
      %240 = vector.broadcast %211 : vector<1x128xf32> to vector<2x128xf32>
      %241 = arith.mulf %239, %240 : vector<2x128xf32>
      %242 = vector.broadcast %212 : vector<1x128xf32> to vector<2x128xf32>
      %243 = arith.addf %241, %242 : vector<2x128xf32>
      %244 = arith.truncf %243 : vector<2x128xf32> to vector<2x128xbf16>
      %c0_124 = arith.constant 0 : index
      %c0_125 = arith.constant 0 : index
      %245 = vector.load %arg16[%c0_124, %c0_125] : memref<128x128xbf16, #tpu.memory_space<vmem>>, vector<128x128xbf16>
      %cst_126 = arith.constant dense<0.000000e+00> : vector<2x128xf32>
      %246 = tpu.matmul %244, %245, %cst_126 {dimension_numbers = #tpu.dot_dimension_numbers<[1], [0], [0], [1], [0, 0, 1, 1], [], []>} : vector<2x128xbf16>, vector<128x128xbf16>, vector<2x128xf32> -> vector<2x128xf32>
      %c0_127 = arith.constant 0 : index
      %c0_128 = arith.constant 0 : index
      %247 = vector.load %arg17[%c0_127, %c0_128] : memref<1x128xf32, #tpu.memory_space<vmem>>, vector<1x128xf32>
      %248 = vector.broadcast %247 : vector<1x128xf32> to vector<2x128xf32>
      %249 = arith.addf %246, %248 : vector<2x128xf32>
      %cst_129 = arith.constant dense<0xFF800000> : vector<2xf32>
      %250 = vector.multi_reduction <maximumf>, %249, %cst_129 [1] : vector<2x128xf32> to vector<2xf32>
      %251 = vector.shape_cast %250 : vector<2xf32> to vector<2x1xf32>
      %252 = vector.broadcast %251 : vector<2x1xf32> to vector<2x128xf32>
      %253 = arith.subf %249, %252 : vector<2x128xf32>
      %254 = math.exp %253 : vector<2x128xf32>
      %cst_130 = arith.constant dense<0.000000e+00> : vector<2xf32>
      %255 = vector.multi_reduction <add>, %254, %cst_130 [1] : vector<2x128xf32> to vector<2xf32>
      %256 = vector.shape_cast %255 : vector<2xf32> to vector<2x1xf32>
      %257 = vector.broadcast %256 : vector<2x1xf32> to vector<2x128xf32>
      %258 = arith.divf %254, %257 : vector<2x128xf32>
      %c0_131 = arith.constant 0 : index
      %c0_132 = arith.constant 0 : index
      %259 = vector.load %arg18[%c0_131, %c0_132] : memref<2x128xf32, #tpu.memory_space<vmem>>, vector<2x128xf32>
      tpu.vector_store %arg18[%c0_131, %c0_132], %258 {strides = array<i32>} : memref<2x128xf32, #tpu.memory_space<vmem>>, vector<2x128xf32>,
    } else {
    }
    return
  }
  func.func @transform_0(%arg0: i32) -> (i32, i32) {
    %c0_i32 = arith.constant 0 : i32
    %c0_i32_0 = arith.constant 0 : i32
    %c0_i32_1 = arith.constant 0 : i32
    return %c0_i32, %c0_i32_0 : i32, i32
  }
  func.func @transform_1(%arg0: i32) -> (i32, i32) {
    %c0_i32 = arith.constant 0 : i32
    %c0_i32_0 = arith.constant 0 : i32
    %c0_i32_1 = arith.constant 0 : i32
    return %c0_i32, %c0_i32_0 : i32, i32
  }
  func.func @transform_2(%arg0: i32) -> (i32, i32) {
    %c0_i32 = arith.constant 0 : i32
    %c0_i32_0 = arith.constant 0 : i32
    %c0_i32_1 = arith.constant 0 : i32
    return %c0_i32, %c0_i32_0 : i32, i32
  }
  func.func @transform_3(%arg0: i32) -> (i32, i32, i32) {
    %c0_i32 = arith.constant 0 : i32
    %c0_i32_0 = arith.constant 0 : i32
    %c0_i32_1 = arith.constant 0 : i32
    return %arg0, %c0_i32, %c0_i32_0 : i32, i32, i32
  }
  func.func @transform_4(%arg0: i32) -> (i32, i32, i32) {
    %c0_i32 = arith.constant 0 : i32
    %c0_i32_0 = arith.constant 0 : i32
    %c0_i32_1 = arith.constant 0 : i32
    return %arg0, %c0_i32, %c0_i32_0 : i32, i32, i32
  }
  func.func @transform_5(%arg0: i32) -> (i32, i32, i32) {
    %c0_i32 = arith.constant 0 : i32
    %c0_i32_0 = arith.constant 0 : i32
    %c0_i32_1 = arith.constant 0 : i32
    return %arg0, %c0_i32, %c0_i32_0 : i32, i32, i32
  }
  func.func @transform_6(%arg0: i32) -> (i32, i32, i32) {
    %c0_i32 = arith.constant 0 : i32
    %c0_i32_0 = arith.constant 0 : i32
    %c0_i32_1 = arith.constant 0 : i32
    return %arg0, %c0_i32, %c0_i32_0 : i32, i32, i32
  }
  func.func @transform_7(%arg0: i32) -> (i32, i32, i32) {
    %c0_i32 = arith.constant 0 : i32
    %c0_i32_0 = arith.constant 0 : i32
    %c0_i32_1 = arith.constant 0 : i32
    return %arg0, %c0_i32, %c0_i32_0 : i32, i32, i32
  }
  func.func @transform_8(%arg0: i32) -> (i32, i32, i32) {
    %c0_i32 = arith.constant 0 : i32
    %c0_i32_0 = arith.constant 0 : i32
    %c0_i32_1 = arith.constant 0 : i32
    return %arg0, %c0_i32, %c0_i32_0 : i32, i32, i32
  }
  func.func @transform_9(%arg0: i32) -> (i32, i32, i32) {
    %c0_i32 = arith.constant 0 : i32
    %c0_i32_0 = arith.constant 0 : i32
    %c0_i32_1 = arith.constant 0 : i32
    return %arg0, %c0_i32, %c0_i32_0 : i32, i32, i32
  }
  func.func @transform_10(%arg0: i32) -> (i32, i32, i32) {
    %c0_i32 = arith.constant 0 : i32
    %c0_i32_0 = arith.constant 0 : i32
    %c0_i32_1 = arith.constant 0 : i32
    return %arg0, %c0_i32, %c0_i32_0 : i32, i32, i32
  }
  func.func @transform_11(%arg0: i32) -> (i32, i32, i32) {
    %c0_i32 = arith.constant 0 : i32
    %c0_i32_0 = arith.constant 0 : i32
    %c0_i32_1 = arith.constant 0 : i32
    return %arg0, %c0_i32, %c0_i32_0 : i32, i32, i32
  }
  func.func @transform_12(%arg0: i32) -> (i32, i32, i32) {
    %c0_i32 = arith.constant 0 : i32
    %c0_i32_0 = arith.constant 0 : i32
    %c0_i32_1 = arith.constant 0 : i32
    return %arg0, %c0_i32, %c0_i32_0 : i32, i32, i32
  }
  func.func @transform_13(%arg0: i32) -> (i32, i32) {
    %c0_i32 = arith.constant 0 : i32
    %c0_i32_0 = arith.constant 0 : i32
    %c0_i32_1 = arith.constant 0 : i32
    return %c0_i32, %c0_i32_0 : i32, i32
  }
  func.func @transform_14(%arg0: i32) -> (i32, i32) {
    %c0_i32 = arith.constant 0 : i32
    %c0_i32_0 = arith.constant 0 : i32
    %c0_i32_1 = arith.constant 0 : i32
    return %c0_i32, %c0_i32_0 : i32, i32
  }
  func.func @transform_15(%arg0: i32) -> (i32, i32) {
    %c0_i32 = arith.constant 0 : i32
    %c0_i32_0 = arith.constant 0 : i32
    %c0_i32_1 = arith.constant 0 : i32
    return %c0_i32, %c0_i32_0 : i32, i32
  }
  func.func @transform_16(%arg0: i32) -> (i32, i32) {
    %c0_i32 = arith.constant 0 : i32
    %c0_i32_0 = arith.constant 0 : i32
    %c0_i32_1 = arith.constant 0 : i32
    return %c0_i32, %c0_i32_0 : i32, i32
  }
  func.func @transform_17(%arg0: i32) -> (i32, i32) {
    %c0_i32 = arith.constant 0 : i32
    %c0_i32_0 = arith.constant 0 : i32
    %c0_i32_1 = arith.constant 0 : i32
    return %c0_i32, %c0_i32_0 : i32, i32
  }
}

</mosaic_0001>

<bundles_post_ra>
// kernel: vim_forward.1
= control target key start
LH: loop header
LB: loop body
LE: loop exit
PB: predicated region body
PF: predicated region fallthrough
CT: control target
= control target key end

     0   :  { %s4448_s0 = inlined_call_operand.vmem [shape: f32[8,256], index: 0, kind: input, shape index: {}]   ;;  %s4449_s1 = inlined_call_operand.vmem [shape: bf16[256,128], index: 1, kind: input, shape index: {}]   ;;  %s4450_s2 = inlined_call_operand.vmem [shape: f32[1,128], index: 2, kind: input, shape index: {}]   ;;  %s4451_s3 = inlined_call_operand.vmem [shape: f32[2,1,128], index: 3, kind: input, shape index: {}]   ;;  %s4452_s4 = inlined_call_operand.vmem [shape: f32[2,1,128], index: 4, kind: input, shape index: {}]   ;;  %s4453_s5 = inlined_call_operand.vmem [shape: bf16[2,128,128], index: 5, kind: input, shape index: {}]   ;;  %s4454_s6 = inlined_call_operand.vmem [shape: f32[2,1,128], index: 6, kind: input, shape index: {}]   ;;  %s4455_s7 = inlined_call_operand.vmem [shape: bf16[2,128,256], index: 7, kind: input, shape index: {}]   ;;  %s4456_s8 = inlined_call_operand.vmem [shape: f32[2,1,256], index: 8, kind: input, shape index: {}]   ;;  %s4457_s9 = inlined_call_operand.vmem [shape: bf16[2,128,256], index: 9, kind: input, shape index: {}]   ;;  %s4458_s10 = inlined_call_operand.vmem [shape: f32[2,1,256], index: 10, kind: input, shape index: {}]   ;;  %s4459_s11 = inlined_call_operand.vmem [shape: f32[2,16,128], index: 11, kind: input, shape index: {}]   ;;  %s4460_s12 = inlined_call_operand.vmem [shape: f32[2,1,128], index: 12, kind: input, shape index: {}]   ;;  %s4461_s13 = inlined_call_operand.vmem [shape: f32[1,128], index: 13, kind: input, shape index: {}]   ;;  %s4462_s14 = inlined_call_operand.vmem [shape: f32[1,128], index: 14, kind: input, shape index: {}]   ;;  %s4463_s15 = inlined_call_operand.vmem [shape: bf16[128,128], index: 15, kind: input, shape index: {}]   ;;  %s4464_s16 = inlined_call_operand.vmem [shape: f32[1,128], index: 16, kind: input, shape index: {}]   ;;  %s4465_s17 = inlined_call_operand.hbm [shape: f32[2,128], index: 17, kind: output, shape index: {}]  }
   0x1   :  { %4470 = sst [smem:[#allocation10_spill]] %s4448_s0 }
   0x2   :  { %4471 = sst [smem:[#allocation11_spill]] %s4449_s1 }
   0x3   :  { %4472 = sst [smem:[#allocation12_spill]] %s4453_s5 }
   0x4   :  { %4473 = sst [smem:[#allocation13_spill]] %s4455_s7 }
   0x5   :  { %4474 = sst [smem:[#allocation14_spill]] %s4462_s14 }
   0x6   :  { %4475 = sst [smem:[#allocation15_spill]] %s4464_s16 }
   0x7   :  { %4476 = sst [smem:[#allocation16_spill]] %s4465_s17 }
   0x8   :  { %22 = vsyncpa [#allocation7], 0  ;;  %s3633_s24 = smov 0  }
   0x9 LB: > { %4477 = sst [smem:[#allocation9_spill]] %s3533_s24  ;;  %s3639_s25 = sadd.s32 4294967295, %s3533_s24   ;;  %s3533_s24 = sphi %s3633_s24, %s28_s24  }
   0xa   : > { %p3122_p0 = scmp.ge.s32.totalorder %s3533_s24, 1  ;;  %p563_p1 = scmp.lt.s32.totalorder %s3533_s24, 3 }
   0xc   : > { %p564_p2 = pnand %p3122_p0, %p563_p1 }
   0xd   : > { %p645_p3 = scmp.lt.s32.totalorder (!%p564_p2), %s3639_s25, 1  ;;  %s4478_s5 = sld [smem:[#allocation12_spill]] (!%p564_p2) }
   0xe   : > { %567 = sbr.rel (%p564_p2) target bundleno = 2469 (0x9a5), region = 88  ;;  %s4479_s7 = sld [smem:[#allocation13_spill]] (!%p564_p2) }
   0xf   : > { %p3133_p4 = scmp.ne.s32.totalorder (!%p564_p2), %s3639_s25, 0 }
  0x15   : > { %s3645_s26 = scalar_select %p645_p3, %s3639_s25, 1 }
  0x16   : > { %689 = sbr.rel (%p3133_p4) target bundleno = 279 (0x117), region = 92  ;;  %s4480_s1 = sld [smem:[#allocation11_spill]] (!%p3133_p4)  ;;  %v3134_v21 = vld [vmem:[%s4450_s2] ss:$0 sm:$0xff] (!%p3133_p4) }
  0x17   : > { %s3213_s19 = sshll.u32 %s3645_s26, 6  ;;  %s3214_s28 = sshll.u32 %s3645_s26, 7 }
  0x18   : > { %s3663_s27 = scalar_lea.vmem %s4478_s5, %s3213_s19  ;;  %s3669_s16 = scalar_lea.vmem %s4479_s7, %s3214_s28 }
  0x19   : > { %s3127_s29 = sshll.u32 %s3645_s26, 1  ;;  %s3680_s20 = scalar_lea.vmem %s4457_s9, %s3214_s28 }
  0x1a   : > { %s3675_s30 = scalar_lea.vmem %s4456_s8, %s3127_s29  ;;  %s3685_s23 = scalar_lea.vmem %s4458_s10, %s3127_s29 }
  0x1b   : > { %s3216_s21 = sshll.u32 %s3645_s26, 4  ;;  %s4481_s0 = sld [smem:[#allocation10_spill]] (!%p3133_p4) }
  0x1c   : > { %s3691_s5 = scalar_lea.vmem %s4459_s11, %s3216_s21  ;;  %v3319_v0 = vld [vmem:[%s4480_s1 + $0x40] sm:$0xff] (!%p3133_p4)   ;;  %v3321_v2 = vld [vmem:[%s4480_s1 + $0x48] sm:$0xff] (!%p3133_p4)   ;;  %v3323_v4 = vld [vmem:[%s4480_s1 + $0x50] sm:$0xff] (!%p3133_p4)  }
  0x1d   : > { %v3320_v1 = vld [vmem:[%s4480_s1] sm:$0xff]   ;;  %3217 = vmatprep.subr.bf16.mxu0 %v3319_v0  ;;  %v3322_v3 = vld [vmem:[%s4480_s1 + $0x8] sm:$0xff]   ;;  %v3324_v5 = vld [vmem:[%s4480_s1 + $0x10] sm:$0xff]  }
  0x1e   : > { %3218 = vmatpush3.bf16.msra.mxu0 %v3320_v1  ;;  %v3325_v6 = vld [vmem:[%s4480_s1 + $0x58] sm:$0xff]   ;;  %v3327_v8 = vld [vmem:[%s4480_s1 + $0x60] sm:$0xff]   ;;  %v3329_v10 = vld [vmem:[%s4480_s1 + $0x68] sm:$0xff]  }
  0x1f   : > { %3219 = vmatprep.subr.bf16.mxu0 %v3321_v2  ;;  %v3326_v7 = vld [vmem:[%s4480_s1 + $0x18] sm:$0xff]   ;;  %v3328_v9 = vld [vmem:[%s4480_s1 + $0x20] sm:$0xff]   ;;  %v3330_v13 = vld [vmem:[%s4480_s1 + $0x28] sm:$0xff]  }
  0x20   : > { %v3331_v14 = vld [vmem:[%s4480_s1 + $0x70] sm:$0xff]   ;;  %v3333_v16 = vld [vmem:[%s4480_s1 + $0x78] sm:$0xff]  }
  0x21   : > { %v691_v11 = vld [vmem:[%s4481_s0 + $0x8] sm:$0xff]  ;;  %v3332_v15 = vld [vmem:[%s4480_s1 + $0x30] sm:$0xff]   ;;  %v3334_v17 = vld [vmem:[%s4480_s1 + $0x38] sm:$0xff]  }
  0x22   : > { %3220 = vmatpush3.bf16.msra.mxu0 %v3322_v3  ;;  %v693_v12 = vpack.c.bf16 %v691_v11, %v691_v11  ;;  %v690_v18 = vld [vmem:[%s4481_s0] sm:$0xff] }
  0x23   : > { %3221 = vmatprep.subr.bf16.mxu0 %v3323_v4  ;;  %v692_v19 = vpack.c.bf16 %v690_v18, %v690_v18 }
  0x24   : > { %861 = vmatprep.mubr.bf16.mxu0 %v693_v12 }
  0x26   : > { %3222 = vmatpush3.bf16.msra.mxu0 %v3324_v5 }
  0x27   : > { %3223 = vmatprep.subr.bf16.mxu0 %v3325_v6 }
  0x2a   : > { %3224 = vmatpush3.bf16.msra.mxu0 %v3326_v7 }
  0x2b   : > { %3225 = vmatprep.subr.bf16.mxu0 %v3327_v8 }
  0x2e   : > { %3226 = vmatpush3.bf16.msra.mxu0 %v3328_v9 }
  0x2f   : > { %3227 = vmatprep.subr.bf16.mxu0 %v3329_v10 }
  0x32   : > { %3228 = vmatpush3.bf16.msra.mxu0 %v3330_v13 }
  0x33   : > { %3229 = vmatprep.subr.bf16.mxu0 %v3331_v14 }
  0x36   : > { %3230 = vmatpush3.bf16.msra.mxu0 %v3332_v15 }
  0x37   : > { %3231 = vmatprep.subr.bf16.mxu0 %v3333_v16 }
  0x3a   : > { %3232 = vmatpush3.bf16.msra.mxu0 %v3334_v17 }
  0x3d   : > { %862 = vmatmul.mubr.bf16.vlgmr.msra.gmra.mrb[0].mxu0 %v692_v19 }
 0x110   : > { %v3233_v20 = vpop.f32.mrb[0].mxu0 }
 0x111   : > { %v3234_v22 = vpop.f32.mrb[1].mxu0 }
 0x112   : > { %v3235_v23 = vadd.f32 %v3234_v22, %v3233_v20  ;;  %v3236_v24 = vpop.f32.mrb[2].mxu0 }
 0x113   : > { %v3237_v25 = vpop.f32.mrb[3].mxu0 }
 0x114   : > { %v864_v26 = vadd.f32 %v3235_v23, %v3134_v21 }
 0x116   : > { %869 = vst [vmem:[#allocation2] sm:$0xff] %v864_v26 }
 0x117 PF: > { %v873_v27 = vlaneseq  ;;  %v3335_v31 = vld [vmem:[%s3663_s27] sm:$0xff]   ;;  %v3535_v32 = vmov 0.0   ;;  %v3336_v33 = vld [vmem:[%s3663_s27 + $0x8] sm:$0xff]   ;;  %v3337_v39 = vld [vmem:[%s3663_s27 + $0x10] sm:$0xff]   ;;  %vm3536_vm1 = vmmov 0   ;;  %s4482_s14 = scalar_lea.vmem %s4451_s3, %s3645_s26  ;;  %s4483_s22 = scalar_lea.vmem %s4452_s4, %s3645_s26  ;;  %v3537_v7 = vmov 0  }
 0x118   : > { %3257 = vmatprep.subr.bf16.mxu0 %v3535_v32  ;;  %v3338_v40 = vld [vmem:[%s3663_s27 + $0x18] sm:$0xff]   ;;  %v3339_v41 = vld [vmem:[%s3663_s27 + $0x20] sm:$0xff]   ;;  %3273 = vmatprep.mubr.msk.bf16.mxu0 %vm3536_vm1, %v3535_v32  ;;  %v3340_v42 = vld [vmem:[%s3663_s27 + $0x28] sm:$0xff]   ;;  %s4484_s17 = scalar_lea.vmem %s4454_s6, %s3645_s26  ;;  %vm2763_vm7 = vcmask 1041409   ;;  %vm2766_vm8 = vcmask 1042434   ;;  %vm2769_vm9 = vcmask 1043459  }
 0x119   : > { %v3756_v29 = vand.u32 127, %v873_v27  ;;  %3258 = vmatpush3.bf16.msra.mxu0 %v3335_v31  ;;  %v3341_v43 = vld [vmem:[%s3663_s27 + $0x30] sm:$0xff]   ;;  %v3342_v44 = vld [vmem:[%s3663_s27 + $0x38] sm:$0xff]   ;;  %v3343_v45 = vld [vmem:[%s3669_s16 + $0x4] ss:$8 sps:$4 sm:$0xff]   ;;  %1165 = vmatprep.mubr.bf16.mxu1 %v3537_v7  ;;  %vm2772_vm10 = vcmask 1044484  }
 0x11a   : > { %3259 = vmatprep.subr.bf16.mxu0 %v3535_v32  ;;  %v3345_v46 = vld [vmem:[%s3669_s16] ss:$8 sps:$4 sm:$0xff]   ;;  %v3346_v47 = vld [vmem:[%s3669_s16 + $0x14] ss:$8 sps:$4 sm:$0xff]   ;;  %1133 = vmatprep.subr.bf16.mxu1 %v3343_v45  ;;  %v3348_v48 = vld [vmem:[%s3669_s16 + $0x10] ss:$8 sps:$4 sm:$0xff]  }
 0x11b   : > { %vm875_vm0 = vcmp.lt.s32.totalorder %v3756_v29, 32  ;;  %1134 = vmatpush1.bf16.msra.mxu1 %v3345_v46  ;;  %v3349_v49 = vld [vmem:[%s3669_s16 + $0x24] ss:$8 sps:$4 sm:$0xff]   ;;  %v3351_v50 = vld [vmem:[%s3669_s16 + $0x20] ss:$8 sps:$4 sm:$0xff]   ;;  %vm2775_vm11 = vcmask 1045509  }
 0x11c   : > { %1135 = vmatprep.subr.bf16.mxu1 %v3346_v47  ;;  %v3352_v51 = vld [vmem:[%s3669_s16 + $0x34] ss:$8 sps:$4 sm:$0xff]   ;;  %v3354_v52 = vld [vmem:[%s3669_s16 + $0x30] ss:$8 sps:$4 sm:$0xff]   ;;  %v3355_v53 = vld [vmem:[%s3669_s16 + $0x44] ss:$8 sps:$4 sm:$0xff]  }
 0x11d   : > { %v870_v28 = vld [vmem:[#allocation2] sm:$0xff]  ;;  %3260 = vmatpush3.bf16.msra.mxu0 %v3336_v33  ;;  %v3358_v55 = vld [vmem:[%s3669_s16 + $0x54] ss:$8 sps:$4 sm:$0xff]   ;;  %v3360_v56 = vld [vmem:[%s3669_s16 + $0x50] ss:$8 sps:$4 sm:$0xff]   ;;  %v3823_v33 = vshrl.u32 %v873_v27, 7 }
 0x11e   : > { %v878_v30 = vsel %vm875_vm0, %v870_v28, 0.0  ;;  %3261 = vmatprep.subr.bf16.mxu0 %v3535_v32  ;;  %v3357_v54 = vld [vmem:[%s3669_s16 + $0x40] ss:$8 sps:$4 sm:$0xff]   ;;  %v3361_v57 = vld [vmem:[%s3669_s16 + $0x64] ss:$8 sps:$4 sm:$0xff]   ;;  %vm2778_vm12 = vcmask 1046534  }
 0x11f   : > { %879 = vadd.xlane.f32.xlu0 %v878_v30  ;;  %1136 = vmatpush1.bf16.msra.mxu1 %v3348_v48  ;;  %v3363_v58 = vld [vmem:[%s3669_s16 + $0x60] ss:$8 sps:$4 sm:$0xff]   ;;  %v3364_v5 = vld [vmem:[%s3669_s16 + $0x74] ss:$8 sps:$4 sm:$0xff]   ;;  %v3366_v6 = vld [vmem:[%s3669_s16 + $0x70] ss:$8 sps:$4 sm:$0xff]  }
 0x120   : > { %1137 = vmatprep.subr.bf16.mxu1 %v3349_v49  ;;  %v3151_v63 = vld [vmem:[%s4482_s14] ss:$0 sm:$0xff]  ;;  %v3369_v15 = vld [vmem:[%s3680_s20 + $0x4] ss:$8 sps:$4 sm:$0xff]   ;;  %v3372_v17 = vld [vmem:[%s3680_s20 + $0x14] ss:$8 sps:$4 sm:$0xff]  }
 0x121   : > { %3262 = vmatpush3.bf16.msra.mxu0 %v3337_v39  ;;  %v3152_v1 = vld [vmem:[%s4483_s22] ss:$0 sm:$0xff]  ;;  %v3370_v18 = vld [vmem:[%s3680_s20 + $0x10] ss:$8 sps:$4 sm:$0xff]   ;;  %v3375_v19 = vld [vmem:[%s3680_s20 + $0x24] ss:$8 sps:$4 sm:$0xff]  }
 0x122   : > { %3263 = vmatprep.subr.bf16.mxu0 %v3535_v32  ;;  %v3153_v8 = vld [vmem:[%s4484_s17] ss:$0 sm:$0xff]  ;;  %v3378_v21 = vld [vmem:[%s3680_s20 + $0x34] ss:$8 sps:$4 sm:$0xff]   ;;  %v3376_v22 = vld [vmem:[%s3680_s20 + $0x30] ss:$8 sps:$4 sm:$0xff]  }
 0x123   : > { %1138 = vmatpush1.bf16.msra.mxu1 %v3351_v50  ;;  %v3367_v16 = vld [vmem:[%s3680_s20] ss:$8 sps:$4 sm:$0xff]   ;;  %v3381_v23 = vld [vmem:[%s3680_s20 + $0x44] ss:$8 sps:$4 sm:$0xff]   ;;  %v3384_v25 = vld [vmem:[%s3680_s20 + $0x54] ss:$8 sps:$4 sm:$0xff]  }
 0x124   : > { %1139 = vmatprep.subr.bf16.mxu1 %v3352_v51  ;;  %v3373_v20 = vld [vmem:[%s3680_s20 + $0x20] ss:$8 sps:$4 sm:$0xff]   ;;  %v3382_v26 = vld [vmem:[%s3680_s20 + $0x50] ss:$8 sps:$4 sm:$0xff]   ;;  %v3390_v31 = vld [vmem:[%s3680_s20 + $0x74] ss:$8 sps:$4 sm:$0xff]  }
 0x125   : > { %3264 = vmatpush3.bf16.msra.mxu0 %v3338_v40  ;;  %v3379_v24 = vld [vmem:[%s3680_s20 + $0x40] ss:$8 sps:$4 sm:$0xff]   ;;  %vm2781_vm13 = vcmask 1047559   ;;  %p3197_p5 = scmp.ne.s32.totalorder %s3639_s25, 1 }
 0x126   : > { %3265 = vmatprep.subr.bf16.mxu0 %v3535_v32  ;;  %v3385_v30 = vld [vmem:[%s3680_s20 + $0x60] ss:$8 sps:$4 sm:$0xff]   ;;  %vm2812_vm14 = vcmask (!%p3197_p5), 1041408   ;;  %vm3541_vm15 = vmmov (!%p3197_p5), 0   ;;  %s4486_s21 = sld [smem:[#allocation14_spill]] (!%p3197_p5)  ;;  %s4487_s24 = sld [smem:[#allocation15_spill]] (!%p3197_p5) }
 0x127   : > { %1140 = vmatpush1.bf16.msra.mxu1 %v3354_v52  ;;  %v3538_v52 = vmov 1983009808  }
 0x128   : > { %1141 = vmatprep.subr.bf16.mxu1 %v3355_v53  ;;  %v1209_v53 = vunpack.c.l.s4 %v3538_v52 }
 0x129   : > { %3266 = vmatpush3.bf16.msra.mxu0 %v3339_v41 }
 0x12a   : > { %3267 = vmatprep.subr.bf16.mxu0 %v3535_v32 }
 0x12b   : > { %1142 = vmatpush1.bf16.msra.mxu1 %v3357_v54  ;;  %v1210_v54 = vunpack.c.0.s8 %v1209_v53 }
 0x12c   : > { %1143 = vmatprep.subr.bf16.mxu1 %v3358_v55  ;;  %v1190_v55 = vadd.s32 128, %v3756_v29  ;;  %v3487_v29 = vld [vmem:[%s4463_s15 + $0x20] sm:$0xff] (!%p3197_p5)  }
 0x12d   : > { %3268 = vmatpush3.bf16.msra.mxu0 %v3340_v42 }
 0x12e   : > { %3269 = vmatprep.subr.bf16.mxu0 %v3535_v32  ;;  %vm1195_vm2 = vcmp.lt.s32.totalorder %v1190_v55, 160 }
 0x12f   : > { %1144 = vmatpush1.bf16.msra.mxu1 %v3360_v56 }
 0x130   : > { %1145 = vmatprep.subr.bf16.mxu1 %v3361_v57 }
 0x131   : > { %3270 = vmatpush3.bf16.msra.mxu0 %v3341_v43 }
 0x132   : > { %3271 = vmatprep.subr.bf16.mxu0 %v3535_v32  ;;  %v3388_v32 = vld [vmem:[%s3680_s20 + $0x70] ss:$8 sps:$4 sm:$0xff]  }
 0x133   : > { %1146 = vmatpush1.bf16.msra.mxu1 %v3363_v58 }
 0x134   : > { %1147 = vmatprep.subr.bf16.mxu1 %v3364_v5 }
 0x135   : > { %3272 = vmatpush3.bf16.msra.mxu0 %v3342_v44 }
 0x136   : > { %1387 = vmatprep.subr.bf16.mxu0 %v3369_v15 }
 0x137   : > { %1148 = vmatpush1.bf16.msra.mxu1 %v3366_v6 }
 0x1ac   : > { %v880_v34 = vpop.xlane.xlu0 %879 }
 0x1ad   : > { %v881_v35 = vmul.f32 0.03125, %v880_v34  ;;  %v3826_v34 = vsub.s32 0, %v3823_v33 }
 0x1af   : > { %v882_v36 = vsub.f32 %v870_v28, %v881_v35  ;;  %v3387_v28 = vld [vmem:[%s3680_s20 + $0x64] ss:$8 sps:$4 sm:$0xff]   ;;  %v1041_v35 = vld [vmem:[%s3675_s30] sm:$0x3]  ;;  %s4485_s30 = scalar_lea.vmem %s4460_s12, %s3645_s26 }
 0x1b1   : > { %v883_v37 = vsel %vm875_vm0, %v882_v36, 0.0  ;;  %v3830_v36 = vsub.s32 1, %v3823_v33 }
 0x1b2   : > { %v884_v38 = vmul.f32 %v883_v37, %v883_v37 }
 0x1b4   : > { %885 = vadd.xlane.f32.xlu0 %v884_v38  ;;  %v1050_v38 = vrot.slane %v1041_v35, %v3830_v36 }
 0x241   : > { %v886_v59 = vpop.xlane.xlu0 %885 }
 0x242   : > { %v887_v60 = vmul.f32 0.03125, %v886_v59  ;;  %v3836_v59 = vsub.s32 %v1210_v54, %v3823_v33 }
 0x244   : > { %v888_v61 = vadd.f32 1e-05, %v887_v60 }
 0x246   : > { %3391 = vrsqrt.f32 %v888_v61 }
 0x250   : > { %v3392_v62 = vpop.eup %3391 }
 0x251   : > { %v890_v0 = vmul.f32 %v3392_v62, %v883_v37  ;;  %v1046_v37 = vrot.slane %v1041_v35, %v3826_v34  ;;  %v1821_v35 = vsub.s32 5, %v3823_v33 }
 0x253   : > { %v897_v2 = vmul.f32 %v3151_v63, %v890_v0 }
 0x255   : > { %v904_v3 = vadd.f32 %v3152_v1, %v897_v2 }
 0x257   : > { %v905_v4 = vpack.c.bf16 %v904_v3, %v904_v3 }
 0x259   : > { %3274 = vmatmul.mubr.bf16.vlgmr.msra.gmra.mrb[0].mxu0 %v905_v4 }
 0x25a   : > { %1419 = vmatprep.mubr.bf16.mxu0 %v3537_v7  ;;  %1388 = vmatpush1.bf16.msra.mxu0 %v3367_v16 }
 0x25b   : > { %1389 = vmatprep.subr.bf16.mxu0 %v3372_v17 }
 0x25e   : > { %1390 = vmatpush1.bf16.msra.mxu0 %v3370_v18 }
 0x25f   : > { %1391 = vmatprep.subr.bf16.mxu0 %v3375_v19 }
 0x262   : > { %1392 = vmatpush1.bf16.msra.mxu0 %v3373_v20  ;;  %v1295_v20 = vld [vmem:[%s3685_s23] sm:$0x3] }
 0x263   : > { %1393 = vmatprep.subr.bf16.mxu0 %v3378_v21  ;;  %v1304_v21 = vrot.slane %v1295_v20, %v3830_v36 }
 0x266   : > { %1394 = vmatpush1.bf16.msra.mxu0 %v3376_v22 }
 0x267   : > { %1395 = vmatprep.subr.bf16.mxu0 %v3381_v23 }
 0x26a   : > { %1396 = vmatpush1.bf16.msra.mxu0 %v3379_v24 }
 0x26b   : > { %1397 = vmatprep.subr.bf16.mxu0 %v3384_v25 }
 0x26e   : > { %1398 = vmatpush1.bf16.msra.mxu0 %v3382_v26 }
 0x26f   : > { %1399 = vmatprep.subr.bf16.mxu0 %v3387_v28 }
 0x272   : > { %1400 = vmatpush1.bf16.msra.mxu0 %v3385_v30 }
 0x273   : > { %1401 = vmatprep.subr.bf16.mxu0 %v3390_v31 }
 0x276   : > { %1402 = vmatpush1.bf16.msra.mxu0 %v3388_v32  ;;  %v1810_v32 = vsub.s32 4, %v3823_v33 }
 0x32c   : > { %v1011_v9 = vpop.f32.mrb[0].mxu0 }
 0x32d   : > { %v3802_v10 = vadd.f32 %v3153_v8, %v1011_v9  ;;  %v3275_v11 = vpop.f32.mrb[1].mxu0 }
 0x32e   : > { %v1014_v12 = vpop.f32.mrb[2].mxu0 }
 0x32f   : > { %v3276_v13 = vpop.f32.mrb[3].mxu0  ;;  %v1024_v14 = vpack.c.bf16 %v3802_v10, %v3802_v10 }
 0x331   : > { %1166 = vmatmul.mubr.bf16.vlgmr.msra.gmra.mrb[0].mxu1 %v1024_v14 }
 0x404   : > { %v1167_v39 = vpop.f32.mrb[0].mxu1 }
 0x405   : > { %v1168_v40 = vadd.f32 %v1167_v39, %v1046_v37  ;;  %v1169_v41 = vpop.f32.mrb[1].mxu1  ;;  %v1843_v37 = vsub.s32 7, %v3823_v33 }
 0x406   : > { %v1170_v42 = vadd.f32 %v1169_v41, %v1050_v38  ;;  %v1171_v43 = vpop.f32.mrb[2].mxu1 }
 0x407   : > { %v1174_v44 = vmin.f32 %v1168_v40, 20.0  ;;  %v1172_v45 = vpop.f32.mrb[3].mxu1  ;;  %vm1176_vm3 = vcmp.gt.f32.partialorder %v1168_v40, 20.0  ;;  %v1832_v43 = vsub.s32 6, %v3823_v33 }
 0x408   : > { %v1175_v27 = vmin.f32 %v1170_v42, 20.0  ;;  %vm1177_vm4 = vcmp.gt.f32.partialorder %v1170_v42, 20.0 }
 0x409   : > { %v1178_v46 = vmul.f32 1.442695, %v1174_v44  ;;  %v1788_v44 = vsub.s32 2, %v3823_v33 }
 0x40a   : > { %v1180_v47 = vmul.f32 1.442695, %v1175_v27 }
 0x40b   : > { %3393 = vpow2.f32 %v1178_v46 }
 0x40c   : > { %3395 = vpow2.f32 %v1180_v47  ;;  %v1799_v47 = vsub.s32 3, %v3823_v33 }
 0x415   : > { %v3394_v48 = vpop.eup %3393 }
 0x416   : > { %v3396_v49 = vpop.eup %3395  ;;  %v1182_v50 = vadd.f32 1.0, %v3394_v48 }
 0x417   : > { %v1183_v51 = vadd.f32 1.0, %v3396_v49  ;;  %v1300_v49 = vrot.slane %v1295_v20, %v3826_v34 }
 0x418   : > { %3397 = vlog2.f32 %v1182_v50 }
 0x419   : > { %3399 = vlog2.f32 %v1183_v51 }
 0x422   : > { %v3398_v56 = vpop.eup %3397 }
 0x423   : > { %v3400_v57 = vpop.eup %3399  ;;  %v1185_v58 = vmul.f32 0.6931472, %v3398_v56 }
 0x424   : > { %v1187_v60 = vmul.f32 0.6931472, %v3400_v57 }
 0x425   : > { %v1188_v61 = vsel %vm1176_vm3, %v1168_v40, %v1185_v58 }
 0x426   : > { %v1204_v62 = vsel %vm875_vm0, %v1188_v61, 0.0  ;;  %v1189_v63 = vsel %vm1177_vm4, %v1170_v42, %v1187_v60 }
 0x427   : > { %v1207_v0 = vcombine.high %v1204_v62, %v1204_v62  ;;  %v1214_v1 = vrot.slane %v1204_v62, %v3836_v59  ;;  %v1205_v2 = vsel %vm1195_vm2, %v1189_v63, 0.0 }
 0x428   : > { %v1225_v3 = vcombine.high %v1205_v2, %v1205_v2  ;;  %v1232_v4 = vrot.slane %v1205_v2, %v3836_v59  ;;  %v3842_v5 = vadd.f32 %v1205_v2, %v1204_v62 }
 0x429   : > { %v1221_v6 = vrot.slane %v1207_v0, %v3836_v59  ;;  %v3539_v0 = vmov 1966171168  }
 0x42a   : > { %v1239_v7 = vrot.slane %v1225_v3, %v3836_v59  ;;  %v1242_v8 = vcombine.low %v1214_v1, %v1232_v4  ;;  %v3178_v9 = vcombine.high %v1214_v1, %v1232_v4  ;;  %v1461_v1 = vunpack.c.l.s4 %v3539_v0  ;;  %v1452_v4 = vld [vmem:[%s3691_s5] sm:$0xff] }
 0x42c   : > { %v1259_v11 = vcombine.low %v1221_v6, %v1239_v7  ;;  %v3179_v12 = vcombine.high %v1221_v6, %v1239_v7  ;;  %v3847_v13 = vrot.slane %v1242_v8, %v3836_v59  ;;  %v3850_v14 = vrot.slane %v3178_v9, %v3836_v59  ;;  %v1453_v9 = vld [vmem:[%s3691_s5 + $0x8] sm:$0xff] }
 0x42d   : > { %v1454_v8 = vmul.f32 1.442695, %v1452_v4 }
 0x42e   : > { %v3853_v15 = vrot.slane %v1259_v11, %v3836_v59  ;;  %v3856_v16 = vrot.slane %v3179_v12, %v3836_v59  ;;  %v1258_v17 = vcombine.low %v3847_v13, %v3850_v14 }
 0x430   : > { %v1275_v18 = vcombine.low %v3853_v15, %v3856_v16 }
 0x432   : > { %v1278_v19 = vpack.c.bf16 %v1275_v18, %v1258_v17  ;;  %v1456_v17 = vmul.f32 1.442695, %v1453_v9 }
 0x434   : > { %1420 = vmatmul.mubr.bf16.vlgmr.msra.gmra.mrb[4].mxu0 %v1278_v19 }
 0x507   : > { %v1421_v22 = vpop.f32.mrb[4].mxu0 }
 0x508   : > { %v1423_v23 = vpop.f32.mrb[5].mxu0  ;;  %v1422_v50 = vadd.f32 %v1421_v22, %v1300_v49 }
 0x509   : > { %v1424_v24 = vadd.f32 %v1423_v23, %v1304_v21  ;;  %v1425_v25 = vpop.f32.mrb[6].mxu0 }
 0x50a   : > { %v1427_v26 = vpop.f32.mrb[7].mxu0  ;;  %v1430_v51 = vmin.f32 %v1422_v50, 20.0  ;;  %v3886_v53 = vadd.f32 %v1425_v25, %v1300_v49  ;;  %vm1432_vm5 = vcmp.gt.f32.partialorder %v1422_v50, 20.0 }
 0x50b   : > { %v3864_v28 = vadd.f32 %v1427_v26, %v1304_v21  ;;  %v1778_v30 = vrot.slane %v1424_v24, %v3830_v36  ;;  %v1767_v31 = vrot.slane %v1424_v24, %v3826_v34  ;;  %v1811_v38 = vrot.slane %v1424_v24, %v1810_v32 }
 0x50c   : > { %v1822_v42 = vrot.slane %v1424_v24, %v1821_v35  ;;  %v1833_v45 = vrot.slane %v1424_v24, %v1832_v43  ;;  %v1789_v27 = vrot.slane %v1424_v24, %v1788_v44  ;;  %v1844_v46 = vrot.slane %v1424_v24, %v1843_v37 }
 0x50d   : > { %1780 = vbcast.lane.b32.xlu0 %v1778_v30, 256  ;;  %1769 = vbcast.lane.b32.xlu1 %v1767_v31, 256  ;;  %v3872_v39 = vrot.slane %v3864_v28, %v1810_v32  ;;  %v3875_v40 = vrot.slane %v3864_v28, %v1821_v35  ;;  %v3878_v41 = vrot.slane %v3864_v28, %v1843_v37  ;;  %v1434_v52 = vmul.f32 1.442695, %v1430_v51 }
 0x50e   : > { %v1800_v48 = vrot.slane %v1424_v24, %v1799_v47  ;;  %v1431_v54 = vmin.f32 %v3886_v53, 20.0  ;;  %v3891_v57 = vrot.slane %v3864_v28, %v3826_v34  ;;  %v3895_v60 = vrot.slane %v3864_v28, %v1788_v44 }
 0x50f   : > { %3401 = vpow2.f32 %v1434_v52  ;;  %v3900_v61 = vrot.slane %v3864_v28, %v3830_v36  ;;  %v3904_v62 = vrot.slane %v3864_v28, %v1799_v47  ;;  %v1462_v36 = vunpack.c.0.s8 %v1461_v1 }
 0x510   : > { %v1436_v56 = vmul.f32 1.442695, %v1431_v54  ;;  %v3912_v7 = vrot.slane %v3864_v28, %v1832_v43  ;;  %vm1433_vm6 = vcmp.gt.f32.partialorder %v3886_v53, 20.0 }
 0x511   : > { %1817 = vbcast.lane.b32.xlu0 %v1811_v38, 264  ;;  %1773 = vbcast.lane.b32.xlu1 %v1767_v31, 264  ;;  %v3917_v11 = vsub.s32 %v1462_v36, %v3823_v33 }
 0x512   : > { %3403 = vpow2.f32 %v1436_v56 }
 0x515   : > { %1828 = vbcast.lane.b32.xlu0 %v1822_v42, 264  ;;  %1784 = vbcast.lane.b32.xlu1 %v1778_v30, 264 }
 0x519   : > { %1839 = vbcast.lane.b32.xlu0 %v1833_v45, 264  ;;  %1791 = vbcast.lane.b32.xlu1 %v1789_v27, 256  ;;  %v3402_v55 = vpop.eup %3401 }
 0x51a   : > { %v1438_v58 = vadd.f32 1.0, %v3402_v55 }
 0x51c   : > { %3405 = vlog2.f32 %v1438_v58  ;;  %v3404_v63 = vpop.eup %3403 }
 0x51d   : > { %1850 = vbcast.lane.b32.xlu0 %v1844_v46, 264  ;;  %1795 = vbcast.lane.b32.xlu1 %v1789_v27, 264  ;;  %v1439_v3 = vadd.f32 1.0, %v3404_v63 }
 0x51f   : > { %3407 = vlog2.f32 %v1439_v3 }
 0x520   : > { %3409 = vpow2.f32 %v1454_v8 }
 0x521   : > { %2407 = vbcast.lane.b32.xlu0 %v1778_v30, 280  ;;  %1802 = vbcast.lane.b32.xlu1 %v1800_v48, 256  ;;  %3411 = vpow2.f32 %v1456_v17 }
 0x525   : > { %2423 = vbcast.lane.b32.xlu0 %v1800_v48, 280  ;;  %1806 = vbcast.lane.b32.xlu1 %v1800_v48, 264 }
 0x526   : > { %v3406_v2 = vpop.eup %3405 }
 0x527   : > { %v1441_v6 = vmul.f32 0.6931472, %v3406_v2 }
 0x529   : > { %2431 = vbcast.lane.b32.xlu0 %v1811_v38, 280  ;;  %1813 = vbcast.lane.b32.xlu1 %v1811_v38, 256  ;;  %v1444_v12 = vsel %vm1432_vm5, %v1422_v50, %v1441_v6  ;;  %v3408_v20 = vpop.eup %3407 }
 0x52a   : > { %v1466_v18 = vrot.slane %v1444_v12, %v3917_v11  ;;  %v1448_v19 = vcombine.high %v1444_v12, %v1444_v12  ;;  %v1443_v23 = vmul.f32 0.6931472, %v3408_v20  ;;  %v3410_v24 = vpop.eup %3409  ;;  %v1944_v49 = vmul.f32 %v1444_v12, %v3847_v13 }
 0x52b   : > { %v3932_v28 = vsub.f32 0.0, %v3410_v24  ;;  %v3412_v32 = vpop.eup %3411 }
 0x52c   : > { %v1474_v21 = vcombine.high %v1466_v18, %v1466_v18  ;;  %v1473_v33 = vrot.slane %v1448_v19, %v3917_v11  ;;  %v1482_v22 = vrot.slane %v1466_v18, %v3917_v11  ;;  %v3948_v43 = vsub.f32 0.0, %v3412_v32 }
 0x52d   : > { %2447 = vbcast.lane.b32.xlu0 %v1833_v45, 280  ;;  %1824 = vbcast.lane.b32.xlu1 %v1822_v42, 256  ;;  %v1958_v13 = vrot.slane %v1944_v49, %v3917_v11  ;;  %v1945_v8 = vmul.f32 %v1448_v19, %v3850_v14 }
 0x52e   : > { %v3929_v25 = vrot.slane %v1474_v21, %v3917_v11  ;;  %v1475_v26 = vcombine.high %v1473_v33, %v1473_v33  ;;  %v1489_v37 = vrot.slane %v1473_v33, %v3917_v11 }
 0x52f   : > { %v1959_v12 = vcombine.high %v1958_v13, %v1958_v13  ;;  %v1982_v24 = vrot.slane %v1945_v8, %v3917_v11 }
 0x530   : > { %v1563_v35 = vrot.slane %v3929_v25, %v3826_v34  ;;  %v1505_v0 = vcombine.high %v1489_v37, %v1489_v37  ;;  %v1506_v33 = vcombine.high %v3929_v25, %v3929_v25 }
 0x531   : > { %2399 = vbcast.lane.b32.xlu0 %v1767_v31, 280  ;;  %1835 = vbcast.lane.b32.xlu1 %v1833_v45, 256  ;;  %v4001_v25 = vrot.slane %v1959_v12, %v3917_v11 }
 0x532   : > { %v1639_v2 = vmul.f32 %v1563_v35, %v3948_v43  ;;  %v1583_v18 = vrot.slane %v1505_v0, %v3826_v34 }
 0x534   : > { %v1674_v21 = vmul.f32 1.442695, %v1639_v2 }
 0x535   : > { %2415 = vbcast.lane.b32.xlu0 %v1789_v27, 280  ;;  %1846 = vbcast.lane.b32.xlu1 %v1844_v46, 256 }
 0x539   : > { %2439 = vbcast.lane.b32.xlu0 %v1822_v42, 280  ;;  %2403 = vbcast.lane.b32.xlu1 %v1778_v30, 272  ;;  %v3935_v30 = vsel %vm1433_vm6, %v3886_v53, %v1443_v23 }
 0x53d   : > { %2455 = vbcast.lane.b32.xlu0 %v1844_v46, 280  ;;  %2419 = vbcast.lane.b32.xlu1 %v1800_v48, 272  ;;  %v1504_v48 = vcombine.high %v1482_v22, %v1482_v22 }
 0x53f   : > { %v1567_v63 = vrot.slane %v1504_v48, %v3826_v34  ;;  %v1983_v48 = vcombine.high %v1982_v24, %v1982_v24 }
 0x541   : > { %1861 = vbcast.lane.b32.xlu0 %v3891_v57, 264  ;;  %2427 = vbcast.lane.b32.xlu1 %v1811_v38, 272  ;;  %v3944_v38 = vrot.slane %v1475_v26, %v3917_v11  ;;  %v1640_v17 = vmul.f32 %v1567_v63, %v3932_v28 }
 0x543   : > { %v1507_v14 = vcombine.high %v3944_v38, %v3944_v38  ;;  %v1676_v32 = vmul.f32 1.442695, %v1640_v17 }
 0x545   : > { %1883 = vbcast.lane.b32.xlu0 %v3895_v60, 264  ;;  %2443 = vbcast.lane.b32.xlu1 %v1833_v45, 272  ;;  %v1638_v45 = vmul.f32 %v1563_v35, %v3932_v28  ;;  %v1641_v35 = vmul.f32 %v1567_v63, %v3948_v43 }
 0x547   : > { %v1672_v53 = vmul.f32 1.442695, %v1638_v45  ;;  %v4010_v45 = vrot.slane %v1507_v14, %v3826_v34 }
 0x549   : > { %1872 = vbcast.lane.b32.xlu0 %v3900_v61, 264  ;;  %2395 = vbcast.lane.b32.xlu1 %v1767_v31, 272  ;;  %v1559_v31 = vrot.slane %v1482_v22, %v3826_v34 }
 0x54b   : > { %v1636_v44 = vmul.f32 %v1559_v31, %v3932_v28  ;;  %v1637_v51 = vmul.f32 %v1559_v31, %v3948_v43  ;;  %v4004_v31 = vrot.slane %v1958_v13, %v3917_v11 }
 0x54d   : > { %1894 = vbcast.lane.b32.xlu0 %v3904_v62, 264  ;;  %2411 = vbcast.lane.b32.xlu1 %v1789_v27, 272  ;;  %v1575_v27 = vrot.slane %v1489_v37, %v3826_v34  ;;  %v1668_v50 = vmul.f32 1.442695, %v1636_v44  ;;  %v1670_v58 = vmul.f32 1.442695, %v1637_v51  ;;  %v2051_v51 = vrot.slane %v4004_v31, %v3826_v34 }
 0x54f   : > { %v1644_v54 = vmul.f32 %v1575_v27, %v3932_v28  ;;  %3413 = vpow2.f32 %v1668_v50  ;;  %v1645_v3 = vmul.f32 %v1575_v27, %v3948_v43  ;;  %v2055_v50 = vrot.slane %v4001_v25, %v3826_v34 }
 0x550   : > { %3415 = vpow2.f32 %v1672_v53 }
 0x551   : > { %1905 = vbcast.lane.b32.xlu0 %v3872_v39, 264  ;;  %2435 = vbcast.lane.b32.xlu1 %v1822_v42, 272  ;;  %v1514_v42 = vrot.slane %v3935_v30, %v3917_v11  ;;  %v1684_v4 = vmul.f32 1.442695, %v1644_v54  ;;  %3417 = vpow2.f32 %v1670_v58  ;;  %v1686_v19 = vmul.f32 1.442695, %v1645_v3 }
 0x553   : > { %v1522_v47 = vcombine.high %v1514_v42, %v1514_v42  ;;  %v1530_v52 = vrot.slane %v1514_v42, %v3917_v11  ;;  %3419 = vpow2.f32 %v1684_v4  ;;  %v1648_v42 = vmul.f32 %v1583_v18, %v3932_v28 }
 0x554   : > { %v4031_v4 = vrot.slane %v1983_v48, %v3917_v11 }
 0x555   : > { %1927 = vbcast.lane.b32.xlu0 %v3912_v7, 264  ;;  %2451 = vbcast.lane.b32.xlu1 %v1844_v46, 272  ;;  %v1579_v46 = vrot.slane %v3944_v38, %v3826_v34  ;;  %v3964_v55 = vrot.slane %v1522_v47, %v3917_v11  ;;  %v3972_v1 = vrot.slane %v1530_v52, %v3826_v34  ;;  %v1692_v13 = vmul.f32 1.442695, %v1648_v42 }
 0x556   : > { %v1552_v36 = vcombine.high %v1530_v52, %v1530_v52  ;;  %v1571_v38 = vrot.slane %v1506_v33, %v3826_v34  ;;  %v4017_v47 = vrot.slane %v1982_v24, %v3917_v11  ;;  %v1678_v52 = vmul.f32 1.442695, %v1641_v35 }
 0x557   : > { %v1646_v56 = vmul.f32 %v1579_v46, %v3932_v28  ;;  %v3978_v6 = vrot.slane %v3964_v55, %v3826_v34  ;;  %v1653_v20 = vmul.f32 %v3972_v1, %v3948_v43  ;;  %v1647_v26 = vmul.f32 %v1579_v46, %v3948_v43 }
 0x558   : > { %v3992_v22 = vrot.slane %v1552_v36, %v3826_v34  ;;  %v4028_v3 = vrot.slane %v4017_v47, %v3826_v34  ;;  %v1649_v36 = vmul.f32 %v1583_v18, %v3948_v43  ;;  %v1643_v12 = vmul.f32 %v1571_v38, %v3948_v43 }
 0x559   : > { %1916 = vbcast.lane.b32.xlu0 %v3875_v40, 264  ;;  %1857 = vbcast.lane.b32.xlu1 %v3891_v57, 256  ;;  %v1688_v9 = vmul.f32 1.442695, %v1646_v56  ;;  %v1655_v23 = vmul.f32 %v3978_v6, %v3948_v43  ;;  %v1702_v37 = vmul.f32 1.442695, %v1653_v20  ;;  %v3414_v44 = vpop.eup %3413  ;;  %v1642_v56 = vmul.f32 %v1571_v38, %v3932_v28 }
 0x55a   : > { %v1657_v27 = vmul.f32 %v3992_v22, %v3948_v43  ;;  %v3416_v46 = vpop.eup %3415  ;;  %v1690_v49 = vmul.f32 1.442695, %v1647_v26  ;;  %v2200_v2 = vmul.f32 0.0, %v3414_v44  ;;  %v1998_v35 = vcombine.high %v4017_v47, %v4017_v47 }
 0x55b   : > { %3421 = vpow2.f32 %v1688_v9  ;;  %v1706_v53 = vmul.f32 1.442695, %v1655_v23  ;;  %v3418_v58 = vpop.eup %3417  ;;  %v1680_v23 = vmul.f32 1.442695, %v1642_v56  ;;  %v1650_v38 = vmul.f32 %v4010_v45, %v3932_v28 }
 0x55c   : > { %3423 = vpow2.f32 %v1674_v21  ;;  %v2201_v14 = vmul.f32 0.0, %v3418_v58  ;;  %v4059_v44 = vrot.slane %v4031_v4, %v3826_v34  ;;  %v1710_v47 = vmul.f32 1.442695, %v1657_v27 }
 0x55d   : > { %1938 = vbcast.lane.b32.xlu0 %v3878_v41, 264  ;;  %1879 = vbcast.lane.b32.xlu1 %v3895_v60, 256  ;;  %3425 = vpow2.f32 %v1686_v19  ;;  %v3420_v8 = vpop.eup %3419  ;;  %v1974_v19 = vcombine.high %v4004_v31, %v4004_v31  ;;  %v1017_v31 = vsub.f32 0.0, %v3802_v10  ;;  %v1696_v27 = vmul.f32 1.442695, %v1650_v38 }
 0x55e   : > { %3427 = vpow2.f32 %v1676_v32 }
 0x55f   : > { %3429 = vpow2.f32 %v1702_v37  ;;  %v1694_v37 = vmul.f32 1.442695, %v1649_v36  ;;  %v1652_v36 = vmul.f32 %v3972_v1, %v3932_v28 }
 0x560   : > { %3431 = vpow2.f32 %v1690_v49 }
 0x561   : > { %2463 = vbcast.lane.b32.xlu0 %v3891_v57, 280  ;;  %1868 = vbcast.lane.b32.xlu1 %v3900_v61, 256  ;;  %3433 = vpow2.f32 %v1678_v52  ;;  %v1700_v38 = vmul.f32 1.442695, %v1652_v36 }
 0x562   : > { %3435 = vpow2.f32 %v1692_v13 }
 0x563   : > { %3437 = vpow2.f32 %v1706_v53  ;;  %v2059_v53 = vrot.slane %v1974_v19, %v3826_v34  ;;  %v1018_v19 = vmul.f32 1.442695, %v1017_v31 }
 0x564   : > { %3439 = vpow2.f32 %v1680_v23 }
 0x565   : > { %2479 = vbcast.lane.b32.xlu0 %v3895_v60, 280  ;;  %1890 = vbcast.lane.b32.xlu1 %v3904_v62, 256  ;;  %v3422_v20 = vpop.eup %3421  ;;  %3441 = vpow2.f32 %v1694_v37 }
 0x566   : > { %v3424_v32 = vpop.eup %3423 }
 0x567   : > { %v3426_v48 = vpop.eup %3425 }
 0x569   : > { %2471 = vbcast.lane.b32.xlu0 %v3900_v61, 280  ;;  %1901 = vbcast.lane.b32.xlu1 %v3872_v39, 256 }
 0x56d   : > { %2487 = vbcast.lane.b32.xlu0 %v3904_v62, 280  ;;  %1923 = vbcast.lane.b32.xlu1 %v3912_v7, 256 }
 0x571   : > { %2495 = vbcast.lane.b32.xlu0 %v3872_v39, 280  ;;  %1912 = vbcast.lane.b32.xlu1 %v3875_v40, 256 }
 0x575   : > { %2511 = vbcast.lane.b32.xlu0 %v3912_v7, 280  ;;  %1934 = vbcast.lane.b32.xlu1 %v3878_v41, 256 }
 0x579   : > { %2503 = vbcast.lane.b32.xlu0 %v3875_v40, 280  ;;  %2459 = vbcast.lane.b32.xlu1 %v3891_v57, 272  ;;  %v1554_v57 = vcombine.high %v3964_v55, %v3964_v55 }
 0x57b   : > { %v4062_v49 = vrot.slane %v1554_v57, %v3826_v34  ;;  %v1651_v57 = vmul.f32 %v4010_v45, %v3948_v43 }
 0x57d   : > { %2519 = vbcast.lane.b32.xlu0 %v3878_v41, 280  ;;  %2475 = vbcast.lane.b32.xlu1 %v3895_v60, 272  ;;  %v2202_v60 = vmul.f32 0.0, %v3416_v46  ;;  %v1682_v46 = vmul.f32 1.442695, %v1643_v12 }
 0x57e   : > { %v1698_v23 = vmul.f32 1.442695, %v1651_v57 }
 0x57f   : > { %v1781_v54 = vpop.permute.xlu0 %1780  ;;  %v1770_v55 = vpop.permute.xlu1 %1769  ;;  %3443 = vpow2.f32 %v1682_v46 }
 0x580   : > { %v2130_v63 = vmul.f32 %v2055_v50, %v1781_v54  ;;  %v2128_v0 = vmul.f32 %v2051_v51, %v1770_v55  ;;  %v3428_v54 = vpop.eup %3427  ;;  %3445 = vpow2.f32 %v1710_v47 }
 0x581   : > { %2467 = vbcast.lane.b32.xlu1 %v3900_v61, 272  ;;  %v3430_v58 = vpop.eup %3429  ;;  %3447 = vpow2.f32 %v1696_v27 }
 0x582   : > { %v4034_v9 = vadd.f32 %v2200_v2, %v2128_v0  ;;  %v4038_v17 = vadd.f32 %v2202_v60, %v2130_v63  ;;  %v4068_v63 = vrot.slane %v1998_v35, %v3826_v34  ;;  %v1999_v0 = vcombine.high %v4031_v4, %v4031_v4  ;;  %v3432_v60 = vpop.eup %3431 }
 0x583   : > { %v1818_v21 = vpop.permute.xlu0 %1817  ;;  %v1774_v33 = vpop.permute.xlu1 %1773  ;;  %3449 = vpow2.f32 %v1698_v23 }
 0x584   : > { %v2137_v18 = vmul.f32 %v4028_v3, %v1818_v21  ;;  %v2129_v24 = vmul.f32 %v2051_v51, %v1774_v33  ;;  %v4044_v26 = vmul.f32 %v3420_v8, %v4034_v9  ;;  %v4047_v61 = vmul.f32 %v3422_v20, %v4038_v17  ;;  %v3434_v21 = vpop.eup %3433 }
 0x585   : > { %2483 = vbcast.lane.b32.xlu1 %v3904_v62, 272  ;;  %v2203_v62 = vmul.f32 0.0, %v3424_v32  ;;  %v2204_v20 = vmul.f32 0.0, %v3428_v54  ;;  %v3436_v4 = vpop.eup %3435  ;;  %v1975_v32 = vcombine.high %v4001_v25, %v4001_v25  ;;  %3451 = vpow2.f32 %v1018_v19 }
 0x586   : > { %v4054_v42 = vadd.f32 %v2201_v14, %v2129_v24  ;;  %v4089_v24 = vrot.slane %v1999_v0, %v3826_v34  ;;  %v3438_v37 = vpop.eup %3437  ;;  %v1654_v25 = vmul.f32 %v3978_v6, %v3932_v28  ;;  %3453 = vpow2.f32 %v1700_v38 }
 0x587   : > { %v1829_v51 = vpop.permute.xlu0 %1828  ;;  %v1785_v52 = vpop.permute.xlu1 %1784  ;;  %v1656_v6 = vmul.f32 %v3992_v22, %v3932_v28 }
 0x588   : > { %v2139_v55 = vmul.f32 %v4059_v44, %v1829_v51  ;;  %v2131_v56 = vmul.f32 %v2055_v50, %v1785_v52  ;;  %v2242_v13 = vmul.f32 %v3426_v48, %v4054_v42  ;;  %v2205_v48 = vmul.f32 0.0, %v3434_v21  ;;  %v3440_v54 = vpop.eup %3439 }
 0x589   : > { %2491 = vbcast.lane.b32.xlu1 %v3872_v39, 272  ;;  %v2206_v36 = vmul.f32 0.0, %v3440_v54  ;;  %v1708_v22 = vmul.f32 1.442695, %v1656_v6 }
 0x58a   : > { %v2219_v2 = vadd.f32 %v2203_v62, %v2131_v56  ;;  %v4075_v50 = vadd.f32 %v2242_v13, %v2137_v18  ;;  %v1659_v18 = vmul.f32 %v4062_v49, %v3948_v43  ;;  %v2063_v62 = vrot.slane %v1975_v32, %v3826_v34 }
 0x58b   : > { %v1840_v8 = vpop.permute.xlu0 %1839  ;;  %v1792_v12 = vpop.permute.xlu1 %1791 }
 0x58c   : > { %v2141_v45 = vmul.f32 %v4068_v63, %v1840_v8  ;;  %v2132_v33 = vmul.f32 %v2059_v53, %v1792_v12  ;;  %v2244_v39 = vmul.f32 %v3432_v60, %v2219_v2  ;;  %v4081_v14 = vmul.f32 %v3430_v58, %v4075_v50 }
 0x58d   : > { %2507 = vbcast.lane.b32.xlu1 %v3912_v7, 272  ;;  %v1714_v56 = vmul.f32 1.442695, %v1659_v18  ;;  %v1704_v12 = vmul.f32 1.442695, %v1654_v25 }
 0x58e   : > { %v4085_v1 = vadd.f32 %v2204_v20, %v2132_v33  ;;  %v4093_v35 = vadd.f32 %v2244_v39, %v2139_v55 }
 0x58f   : > { %v1851_v31 = vpop.permute.xlu0 %1850  ;;  %v1796_v46 = vpop.permute.xlu1 %1795  ;;  %3455 = vpow2.f32 %v1714_v56 }
 0x590   : > { %v2143_v47 = vmul.f32 %v4089_v24, %v1851_v31  ;;  %v2133_v51 = vmul.f32 %v2059_v53, %v1796_v46  ;;  %v4097_v52 = vmul.f32 %v3436_v4, %v4085_v1  ;;  %v4100_v7 = vmul.f32 %v3438_v37, %v4093_v35  ;;  %v3442_v53 = vpop.eup %3441 }
 0x591   : > { %2499 = vbcast.lane.b32.xlu1 %v3875_v40, 272  ;;  %v3444_v57 = vpop.eup %3443  ;;  %3457 = vpow2.f32 %v1704_v12 }
 0x592   : > { %v4104_v55 = vadd.f32 %v2205_v48, %v2133_v51  ;;  %v3446_v8 = vpop.eup %3445  ;;  %v2207_v19 = vmul.f32 0.0, %v3444_v57  ;;  %3459 = vpow2.f32 %v1708_v22  ;;  %v1946_v22 = vmul.f32 %v3935_v30, %v3853_v15 }
 0x593   : > { %v2408_v13 = vpop.permute.xlu0 %2407  ;;  %v1803_v58 = vpop.permute.xlu1 %1802 }
 0x594   : > { %v4108_v27 = vmul.f32 %v2408_v13, %v2219_v2  ;;  %v2134_v0 = vmul.f32 %v2063_v62, %v1803_v58  ;;  %v2246_v60 = vmul.f32 %v3442_v53, %v4104_v55  ;;  %v3448_v21 = vpop.eup %3447  ;;  %v4118_v2 = vcombine.high %v3935_v30, %v3935_v30 }
 0x595   : > { %2515 = vbcast.lane.b32.xlu1 %v3878_v41, 272  ;;  %v1658_v41 = vmul.f32 %v4062_v49, %v3932_v28 }
 0x596   : > { %v2263_v40 = vadd.f32 %v2246_v60, %v2141_v45  ;;  %v4114_v20 = vadd.f32 %v2206_v36, %v2134_v0  ;;  %v3450_v45 = vpop.eup %3449  ;;  %v1521_v37 = vrot.slane %v4118_v2, %v3917_v11 }
 0x597   : > { %v2424_v33 = vpop.permute.xlu0 %2423  ;;  %v1807_v39 = vpop.permute.xlu1 %1806  ;;  %v1712_v53 = vmul.f32 1.442695, %v1658_v41 }
 0x598   : > { %v2135_v4 = vmul.f32 %v2063_v62, %v1807_v39  ;;  %v2247_v23 = vmul.f32 %v3448_v21, %v4114_v20  ;;  %v4121_v18 = vmul.f32 %v3446_v8, %v2263_v40  ;;  %v3452_v46 = vpop.eup %3451  ;;  %v1537_v58 = vrot.slane %v1521_v37, %v3917_v11 }
 0x599   : > { %v3454_v25 = vpop.eup %3453  ;;  %v1523_v36 = vcombine.high %v1521_v37, %v1521_v37  ;;  %3461 = vpow2.f32 %v1712_v53 }
 0x59a   : > { %v2223_v32 = vadd.f32 %v2207_v19, %v2135_v4  ;;  %v3456_v13 = vpop.eup %3455  ;;  %v1553_v8 = vcombine.high %v1537_v58, %v1537_v58  ;;  %v4149_v6 = vrot.slane %v1537_v58, %v3826_v34 }
 0x59b   : > { %v2432_v38 = vpop.permute.xlu0 %2431  ;;  %v1814_v31 = vpop.permute.xlu1 %1813  ;;  %v1551_v19 = vrot.slane %v1523_v36, %v3917_v11 }
 0x59c   : > { %v4128_v48 = vmul.f32 %v2432_v38, %v4075_v50  ;;  %v2136_v51 = vmul.f32 %v4028_v3, %v1814_v31  ;;  %v2248_v54 = vmul.f32 %v3450_v45, %v2223_v32  ;;  %v4131_v56 = vmul.f32 %v2424_v33, %v2223_v32  ;;  %v3458_v21 = vpop.eup %3457 }
 0x59d   : > { %v4165_v32 = vrot.slane %v1553_v8, %v3826_v34  ;;  %v1555_v30 = vcombine.high %v1551_v19, %v1551_v19  ;;  %v4180_v31 = vrot.slane %v1551_v19, %v3826_v34 }
 0x59e   : > { %v4133_v62 = vadd.f32 %v2248_v54, %v2143_v47  ;;  %v4136_v49 = vadd.f32 %v4044_v26, %v2136_v51  ;;  %v1020_v26 = vadd.f32 1.0, %v3452_v46  ;;  %v2006_v46 = vrot.slane %v1946_v22, %v3917_v11 }
 0x59f   : > { %v2448_v57 = vpop.permute.xlu0 %2447  ;;  %v1825_v50 = vpop.permute.xlu1 %1824 }
 0x5a0   : > { %v4139_v0 = vmul.f32 %v2448_v57, %v2263_v40  ;;  %v4142_v3 = vmul.f32 %v3456_v13, %v4133_v62  ;;  %v4145_v60 = vmul.f32 %v3454_v25, %v4136_v49  ;;  %v2138_v47 = vmul.f32 %v4059_v44, %v1825_v50 }
 0x5a1   : > { %3463 = vrcp.f32 %v1020_v26  ;;  %v4195_v57 = vrot.slane %v1555_v30, %v3826_v34  ;;  %v1663_v50 = vmul.f32 %v4180_v31, %v3948_v43  ;;  %v2007_v8 = vcombine.high %v2006_v46, %v2006_v46 }
 0x5a2   : > { %v4152_v40 = vadd.f32 %v4047_v61, %v2138_v47  ;;  %v1661_v61 = vmul.f32 %v4149_v6, %v3948_v43 }
 0x5a3   : > { %v2400_v12 = vpop.permute.xlu0 %2399  ;;  %v1836_v39 = vpop.permute.xlu1 %1835  ;;  %v1667_v22 = vmul.f32 %v4195_v57, %v3948_v43 }
 0x5a4   : > { %v4155_v33 = vmul.f32 %v2400_v12, %v4054_v42  ;;  %v2140_v4 = vmul.f32 %v4068_v63, %v1836_v39  ;;  %v4159_v44 = vmul.f32 %v3458_v21, %v4152_v40  ;;  %v3460_v63 = vpop.eup %3459  ;;  %v1718_v51 = vmul.f32 1.442695, %v1661_v61  ;;  %v3196_v21 = vld [vmem:[%s4485_s30] ss:$0 sm:$0xff] }
 0x5a6   : > { %v4170_v41 = vadd.f32 %v4097_v52, %v2140_v4  ;;  %v1665_v52 = vmul.f32 %v4165_v32, %v3948_v43  ;;  %3465 = vpow2.f32 %v1718_v51 }
 0x5a7   : > { %v2416_v42 = vpop.permute.xlu0 %2415  ;;  %v1847_v37 = vpop.permute.xlu1 %1846 }
 0x5a8   : > { %v4173_v45 = vmul.f32 %v2416_v42, %v4104_v55  ;;  %v2142_v38 = vmul.f32 %v4089_v24, %v1847_v37  ;;  %v4177_v15 = vmul.f32 %v3460_v63, %v4170_v41  ;;  %v3462_v55 = vpop.eup %3461  ;;  %v1726_v36 = vmul.f32 1.442695, %v1665_v52 }
 0x5aa   : > { %v4183_v54 = vadd.f32 %v2247_v23, %v2142_v38  ;;  %v2014_v23 = vrot.slane %v2006_v46, %v3917_v11  ;;  %3467 = vpow2.f32 %v1726_v36  ;;  %v2021_v38 = vrot.slane %v2007_v8, %v3917_v11 }
 0x5ab   : > { %v2440_v25 = vpop.permute.xlu0 %2439  ;;  %v2404_v53 = vpop.permute.xlu1 %2403 }
 0x5ac   : > { %v4188_v24 = vmul.f32 %v2440_v25, %v4093_v35  ;;  %v2523_v13 = vmul.f32 %v2404_v53, %v4038_v17  ;;  %v4192_v58 = vmul.f32 %v3462_v55, %v4183_v54  ;;  %v1947_v17 = vmul.f32 %v4118_v2, %v3856_v16  ;;  %v3464_v12 = vpop.eup %3463 }
 0x5ad   : > { %v2022_v19 = vcombine.high %v2014_v23, %v2014_v23  ;;  %v4215_v63 = vrot.slane %v2014_v23, %v3826_v34  ;;  %v4218_v16 = vmul.f32 %v3464_v12, %v3802_v10  ;;  %v4221_v2 = vmul.f32 %v3196_v21, %v3842_v5 }
 0x5ae   : > { %v2560_v47 = vadd.f32 %v4108_v27, %v2523_v13  ;;  %v1722_v27 = vmul.f32 1.442695, %v1663_v50  ;;  %v4225_v30 = vrot.slane %v1947_v17, %v3917_v11  ;;  %v1730_v10 = vmul.f32 1.442695, %v1667_v22 }
 0x5af   : > { %v4201_v26 = vpop.permute.xlu0 %2455  ;;  %v2420_v35 = vpop.permute.xlu1 %2419  ;;  %v4230_v52 = vrot.slane %v2022_v19, %v3826_v34  ;;  %v2683_v13 = vrot.slane %v4221_v2, 1  ;;  %v2707_v23 = vrot.slane %v4218_v16, 1  ;;  %v2023_v21 = vcombine.high %v2021_v38, %v2021_v38 }
 0x5b0   : > { %v2561_v39 = vrot.slane %v2560_v47, 4  ;;  %v2527_v4 = vmul.f32 %v2420_v35, %v4114_v20  ;;  %3469 = vpow2.f32 %v1722_v27  ;;  %v2038_v36 = vrot.slane %v4225_v30, %v3917_v11  ;;  %v3466_v35 = vpop.eup %3465 }
 0x5b1   : > { %3471 = vpow2.f32 %v1730_v10 }
 0x5b2   : > { %v2562_v61 = vadd.f32 %v2561_v39, %v2560_v47  ;;  %v2574_v42 = vadd.f32 %v4131_v56, %v2527_v4  ;;  %v2708_v47 = vrot.slane %v4218_v16, 2 }
 0x5b3   : > { %v1862_v37 = vpop.permute.xlu0 %1861  ;;  %v2428_v20 = vpop.permute.xlu1 %2427 }
 0x5b4   : > { %v2563_v43 = vrot.slane %v2562_v61, 2  ;;  %v2575_v46 = vrot.slane %v2574_v42, 4  ;;  %v2145_v56 = vmul.f32 %v4215_v63, %v1862_v37  ;;  %v2529_v51 = vmul.f32 %v2428_v20, %v4136_v49 }
 0x5b6   : > { %v2564_v5 = vadd.f32 %v2563_v43, %v2562_v61  ;;  %v2576_v55 = vadd.f32 %v2575_v46, %v2574_v42  ;;  %v2581_v25 = vadd.f32 %v4128_v48, %v2529_v51  ;;  %v4234_v53 = vadd.f32 %v4081_v14, %v2145_v56 }
 0x5b7   : > { %v1884_v50 = vpop.permute.xlu0 %1883  ;;  %v2444_v49 = vpop.permute.xlu1 %2443  ;;  %v4243_v48 = vrot.slane %v2021_v38, %v3826_v34  ;;  %v1660_v61 = vmul.f32 %v4149_v6, %v3932_v28  ;;  %v2684_v42 = vrot.slane %v4221_v2, 2 }
 0x5b8   : > { %v2577_v8 = vrot.slane %v2576_v55, 2  ;;  %v2582_v17 = vrot.slane %v2581_v25, 4  ;;  %v2149_v12 = vmul.f32 %v4230_v52, %v1884_v50  ;;  %v2533_v14 = vmul.f32 %v2444_v49, %v4170_v41  ;;  %v3468_v38 = vpop.eup %3467 }
 0x5b9   : > { %v2328_v39 = vmul.f32 %v3466_v35, %v4234_v53  ;;  %v2565_v4 = vrot.slane %v2564_v5, 1  ;;  %v2046_v41 = vcombine.high %v2038_v36, %v2038_v36 }
 0x5ba   : > { %v2578_v19 = vadd.f32 %v2577_v8, %v2576_v55  ;;  %v2583_v27 = vadd.f32 %v2582_v17, %v2581_v25  ;;  %v4248_v22 = vadd.f32 %v4121_v18, %v2149_v12  ;;  %v2595_v37 = vadd.f32 %v4139_v0, %v2533_v14  ;;  %v3470_v8 = vpop.eup %3469 }
 0x5bb   : > { %v1873_v20 = vpop.permute.xlu0 %1872  ;;  %v2396_v43 = vpop.permute.xlu1 %2395  ;;  %v4257_v18 = vrot.slane %v2023_v21, %v3826_v34  ;;  %v1664_v25 = vmul.f32 %v4165_v32, %v3932_v28  ;;  %v2566_v0 = vadd.f32 %v2565_v4, %v2564_v5  ;;  %v1716_v17 = vmul.f32 1.442695, %v1660_v61 }
 0x5bc   : > { %v2579_v46 = vrot.slane %v2578_v19, 1  ;;  %v2584_v56 = vrot.slane %v2583_v27, 2  ;;  %v2147_v51 = vmul.f32 %v4243_v48, %v1873_v20  ;;  %v2521_v10 = vmul.f32 %v2396_v43, %v4034_v9 }
 0x5bd   : > { %v2596_v55 = vrot.slane %v2595_v37, 4  ;;  %v2332_v6 = vmul.f32 %v3468_v38, %v4248_v22  ;;  %v4267_v21 = vrot.slane %v2038_v36, %v3826_v34  ;;  %v2031_v5 = vcombine.high %v4225_v30, %v4225_v30 }
 0x5be   : > { %v2580_v50 = vadd.f32 %v2579_v46, %v2578_v19  ;;  %v2553_v49 = vadd.f32 %v4155_v33, %v2521_v10  ;;  %v4264_v35 = vadd.f32 %v4100_v7, %v2147_v51  ;;  %v2585_v12 = vadd.f32 %v2584_v56, %v2583_v27  ;;  %v3472_v46 = vpop.eup %3471 }
 0x5bf   : > { %v2597_v9 = vadd.f32 %v2596_v55, %v2595_v37  ;;  %v1895_v14 = vpop.permute.xlu0 %1894  ;;  %v2412_v20 = vpop.permute.xlu1 %2411  ;;  %v4274_v4 = vrot.slane %v2046_v41, %v3826_v34  ;;  %v1724_v37 = vmul.f32 1.442695, %v1664_v25  ;;  %3473 = vpow2.f32 %v1716_v17 }
 0x5c0   : > { %v2666_v43 = vadd.f32 %v2580_v50, %v2566_v0  ;;  %v2554_v38 = vrot.slane %v2553_v49, 4  ;;  %v2151_v32 = vmul.f32 %v4257_v18, %v1895_v14  ;;  %v2525_v7 = vmul.f32 %v2412_v20, %v4085_v1 }
 0x5c1   : > { %v2598_v33 = vrot.slane %v2597_v9, 2  ;;  %v2330_v19 = vmul.f32 %v3470_v8, %v4264_v35  ;;  %v2586_v56 = vrot.slane %v2585_v12, 1  ;;  %v1662_v1 = vmul.f32 %v4180_v31, %v3932_v28 }
 0x5c2   : > { %v2699_v27 = vadd.f32 %v2683_v13, %v2666_v43  ;;  %v2555_v61 = vadd.f32 %v2554_v38, %v2553_v49  ;;  %v4278_v36 = vadd.f32 %v4142_v3, %v2151_v32  ;;  %v2567_v10 = vadd.f32 %v4173_v45, %v2525_v7 }
 0x5c3   : > { %v2599_v51 = vadd.f32 %v2598_v33, %v2597_v9  ;;  %v1906_v30 = vpop.permute.xlu0 %1905  ;;  %v2436_v55 = vpop.permute.xlu1 %2435  ;;  %v2045_v8 = vrot.slane %v2031_v5, %v3917_v11  ;;  %v1666_v31 = vmul.f32 %v4195_v57, %v3932_v28  ;;  %3475 = vpow2.f32 %v1724_v37 }
 0x5c4   : > { %v4285_v41 = vmul.f32 %v2707_v23, %v2699_v27  ;;  %v2556_v13 = vrot.slane %v2555_v61, 2  ;;  %v2153_v0 = vmul.f32 %v4267_v21, %v1906_v30  ;;  %v2531_v3 = vmul.f32 %v2436_v55, %v4152_v40 }
 0x5c5   : > { %v2600_v25 = vrot.slane %v2599_v51, 1  ;;  %v2568_v50 = vrot.slane %v2567_v10, 4  ;;  %v2334_v49 = vmul.f32 %v3472_v46, %v4278_v36  ;;  %v2587_v23 = vadd.f32 %v2586_v56, %v2585_v12 }
 0x5c6   : > { %v2588_v45 = vadd.f32 %v4188_v24, %v2531_v3  ;;  %v4292_v9 = vadd.f32 %v2328_v39, %v2153_v0  ;;  %v2557_v20 = vadd.f32 %v2556_v13, %v2555_v61  ;;  %v1720_v17 = vmul.f32 1.442695, %v1662_v1  ;;  %v4311_v1 = vld [vmem:[#allocation2] sm:$0xff] }
 0x5c7   : > { %v2601_v14 = vadd.f32 %v2600_v25, %v2599_v51  ;;  %v2569_v43 = vadd.f32 %v2568_v50, %v2567_v10  ;;  %v1928_v38 = vpop.permute.xlu0 %1927  ;;  %v2452_v40 = vpop.permute.xlu1 %2451  ;;  %v2536_v24 = vmul.f32 %v4201_v26, %v4133_v62  ;;  %v4301_v28 = vrot.slane %v2045_v8, %v3826_v34 }
 0x5c8   : > { %v2589_v32 = vrot.slane %v2588_v45, 4  ;;  %v2157_v33 = vmul.f32 %v4274_v4, %v1928_v38  ;;  %v2535_v5 = vmul.f32 %v2452_v40, %v4183_v54  ;;  %v2047_v57 = vcombine.high %v2045_v8, %v2045_v8 }
 0x5c9   : > { %v2667_v11 = vadd.f32 %v2601_v14, %v2587_v23  ;;  %v2570_v39 = vrot.slane %v2569_v43, 2  ;;  %v2558_v61 = vrot.slane %v2557_v20, 1  ;;  %v1728_v10 = vmul.f32 1.442695, %v1666_v31 }
 0x5ca   : > { %v2590_v7 = vadd.f32 %v2589_v32, %v2588_v45  ;;  %v4303_v12 = vadd.f32 %v2332_v6, %v2157_v33  ;;  %v2602_v46 = vadd.f32 %v2536_v24, %v2535_v5  ;;  %3477 = vpow2.f32 %v1720_v17 }
 0x5cb   : > { %v2700_v27 = vadd.f32 %v2684_v42, %v2667_v11  ;;  %v2571_v37 = vadd.f32 %v2570_v39, %v2569_v43  ;;  %v1917_v56 = vpop.permute.xlu0 %1916  ;;  %v1858_v51 = vpop.permute.xlu1 %1857  ;;  %v2731_v42 = vrot.slane %v4311_v1, 1  ;;  %v4315_v13 = vrot.slane %v2047_v57, %v3826_v34 }
 0x5cc   : > { %v2591_v62 = vrot.slane %v2590_v7, 2  ;;  %v2155_v26 = vmul.f32 %v4301_v28, %v1917_v56  ;;  %v2144_v54 = vmul.f32 %v4215_v63, %v1858_v51  ;;  %v2603_v6 = vrot.slane %v2602_v46, 4  ;;  %v3474_v63 = vpop.eup %3473 }
 0x5cd   : > { %v2724_v30 = vmul.f32 %v2708_v47, %v2700_v27  ;;  %v2572_v55 = vrot.slane %v2571_v37, 1  ;;  %v2559_v25 = vadd.f32 %v2558_v61, %v2557_v20  ;;  %v2732_v23 = vrot.slane %v4311_v1, 2 }
 0x5ce   : > { %v4317_v0 = vadd.f32 %v2330_v19, %v2155_v26  ;;  %v4320_v3 = vadd.f32 %v4145_v60, %v2144_v54  ;;  %v2592_v45 = vadd.f32 %v2591_v62, %v2590_v7  ;;  %v2604_v47 = vadd.f32 %v2603_v6, %v2602_v46  ;;  %v3476_v60 = vpop.eup %3475 }
 0x5cf   : > { %v2573_v50 = vadd.f32 %v2572_v55, %v2571_v37  ;;  %v1939_v8 = vpop.permute.xlu0 %1938  ;;  %v1880_v31 = vpop.permute.xlu1 %1879  ;;  %3479 = vpow2.f32 %v1728_v10  ;;  %v2747_v32 = vadd.f32 %v2731_v42, %v4285_v41  ;;  %v2748_v39 = vadd.f32 %v2732_v23, %v2724_v30 }
 0x5d0   : > { %v2159_v14 = vmul.f32 %v4315_v13, %v1939_v8  ;;  %v2148_v43 = vmul.f32 %v4230_v52, %v1880_v31  ;;  %v2327_v34 = vmul.f32 %v3474_v63, %v4320_v3  ;;  %v2605_v38 = vrot.slane %v2604_v47, 2 }
 0x5d1   : > { %v2665_v19 = vadd.f32 %v2573_v50, %v2559_v25  ;;  %v2593_v17 = vrot.slane %v2592_v45, 1  ;;  %v2765_v56 = vrot.slane %v2748_v39, 6  ;;  %v2685_v26 = vrot.slane %v4221_v2, 3 }
 0x5d2   : > { %v4326_v40 = vadd.f32 %v2334_v49, %v2159_v14  ;;  %v2305_v20 = vadd.f32 %v4177_v15, %v2148_v43  ;;  %v2606_v24 = vadd.f32 %v2605_v38, %v2604_v47  ;;  %v2762_v15 = vrot.slane %v2747_v32, 7 }
 0x5d3   : > { %v2698_v33 = vadd.f32 %v4221_v2, %v2665_v19  ;;  %v1869_v11 = vpop.permute.xlu1 %1868  ;;  %v2594_v61 = vadd.f32 %v2593_v17, %v2592_v45  ;;  %v2733_v6 = vrot.slane %v4311_v1, 3  ;;  %v2464_v25 = vpop.permute.xlu0 %2463 }
 0x5d4   : > { %v2146_v52 = vmul.f32 %v4243_v48, %v1869_v11  ;;  %v2331_v5 = vmul.f32 %v3476_v60, %v2305_v20  ;;  %v2607_v57 = vrot.slane %v2606_v24, 1  ;;  %v3478_v27 = vpop.eup %3477  ;;  %v2538_v11 = vmul.f32 %v2464_v25, %v4234_v53 }
 0x5d5   : > { %v2722_v7 = vmul.f32 %v2698_v33, %v4218_v16 }
 0x5d6   : > { %v2303_v49 = vadd.f32 %v4159_v44, %v2146_v52  ;;  %v2608_v37 = vadd.f32 %v2607_v57, %v2606_v24  ;;  %v2709_v44 = vrot.slane %v4218_v16, 3 }
 0x5d7   : > { %v2746_v41 = vadd.f32 %v4311_v1, %v2722_v7  ;;  %v1891_v46 = vpop.permute.xlu1 %1890 }
 0x5d8   : > { %v2150_v51 = vmul.f32 %v4257_v18, %v1891_v46  ;;  %v2329_v62 = vmul.f32 %v3478_v27, %v2303_v49  ;;  %v2668_v54 = vadd.f32 %v2608_v37, %v2594_v61 }
 0x5d9   : > { %v2764_v48 = vsel %vm2763_vm7, %v2762_v15, %v2746_v41  ;;  %v3480_v55 = vpop.eup %3479 }
 0x5da   : > { %v2767_v10 = vsel %vm2766_vm8, %v2765_v56, %v2764_v48  ;;  %v2307_v30 = vadd.f32 %v4192_v58, %v2150_v51  ;;  %v2701_v42 = vadd.f32 %v2685_v26, %v2668_v54  ;;  %v2480_v58 = vpop.permute.xlu0 %2479 }
 0x5db   : > { %v1902_v63 = vpop.permute.xlu1 %1901  ;;  %v2542_v7 = vmul.f32 %v2480_v58, %v4248_v22 }
 0x5dc   : > { %v2152_v50 = vmul.f32 %v4267_v21, %v1902_v63  ;;  %v2333_v45 = vmul.f32 %v3480_v55, %v2307_v30  ;;  %v2725_v18 = vmul.f32 %v2709_v44, %v2701_v42 }
 0x5de   : > { %v2344_v47 = vadd.f32 %v2327_v34, %v2152_v50  ;;  %v2749_v8 = vadd.f32 %v2733_v6, %v2725_v18  ;;  %v2472_v21 = vpop.permute.xlu0 %2471 }
 0x5df   : > { %v1924_v31 = vpop.permute.xlu1 %1923  ;;  %v2540_v61 = vmul.f32 %v2472_v21, %v4264_v35  ;;  %v2734_v21 = vrot.slane %v4311_v1, 4 }
 0x5e0   : > { %v2156_v23 = vmul.f32 %v4274_v4, %v1924_v31  ;;  %v2768_v14 = vrot.slane %v2749_v8, 5 }
 0x5e2   : > { %v2348_v43 = vadd.f32 %v2331_v5, %v2156_v23  ;;  %v4342_v19 = vsel %vm2769_vm9, %v2768_v14, %v2767_v10  ;;  %v2488_v39 = vpop.permute.xlu0 %2487 }
 0x5e3   : > { %v1913_v38 = vpop.permute.xlu1 %1912  ;;  %v2544_v48 = vmul.f32 %v2488_v39, %v4278_v36 }
 0x5e4   : > { %v2154_v60 = vmul.f32 %v4301_v28, %v1913_v38 }
 0x5e6   : > { %v4345_v32 = vadd.f32 %v2329_v62, %v2154_v60 }
 0x5e7   : > { %v1935_v33 = vpop.permute.xlu1 %1934 }
 0x5e8   : > { %v2158_v17 = vmul.f32 %v4315_v13, %v1935_v33  ;;  %v2496_v13 = vpop.permute.xlu0 %2495 }
 0x5e9   : > { %v2546_v35 = vmul.f32 %v2496_v13, %v4292_v9  ;;  %v2710_v9 = vrot.slane %v4218_v16, 4 }
 0x5ea   : > { %v4348_v34 = vadd.f32 %v2333_v45, %v2158_v17 }
 0x5eb   : > { %v2460_v24 = vpop.permute.xlu1 %2459 }
 0x5ec   : > { %v2537_v4 = vmul.f32 %v2460_v24, %v4320_v3 }
 0x5ee   : > { %v2609_v52 = vadd.f32 %v2538_v11, %v2537_v4 }
 0x5ef   : > { %v2476_v5 = vpop.permute.xlu1 %2475 }
 0x5f0   : > { %v2610_v57 = vrot.slane %v2609_v52, 4  ;;  %v2541_v28 = vmul.f32 %v2476_v5, %v2305_v20  ;;  %v2512_v20 = vpop.permute.xlu0 %2511 }
 0x5f1   : > { %v2550_v33 = vmul.f32 %v2512_v20, %v4303_v12 }
 0x5f2   : > { %v2611_v27 = vadd.f32 %v2610_v57, %v2609_v52  ;;  %v2623_v15 = vadd.f32 %v2542_v7, %v2541_v28 }
 0x5f3   : > { %v2468_v41 = vpop.permute.xlu1 %2467 }
 0x5f4   : > { %v2612_v37 = vrot.slane %v2611_v27, 2  ;;  %v2624_v46 = vrot.slane %v2623_v15, 4  ;;  %v2539_v56 = vmul.f32 %v2468_v41, %v2303_v49  ;;  %v2504_v14 = vpop.permute.xlu0 %2503 }
 0x5f5   : > { %v2548_v39 = vmul.f32 %v2504_v14, %v4317_v0  ;;  %v2687_v0 = vrot.slane %v4221_v2, 5  ;;  %v2736_v14 = vrot.slane %v4311_v1, 6 }
 0x5f6   : > { %v2613_v51 = vadd.f32 %v2612_v37, %v2611_v27  ;;  %v2625_v53 = vadd.f32 %v2624_v46, %v2623_v15  ;;  %v2616_v62 = vadd.f32 %v2540_v61, %v2539_v56 }
 0x5f7   : > { %v2484_v3 = vpop.permute.xlu1 %2483 }
 0x5f8   : > { %v2626_v26 = vrot.slane %v2625_v53, 2  ;;  %v2617_v54 = vrot.slane %v2616_v62, 4  ;;  %v2543_v22 = vmul.f32 %v2484_v3, %v2307_v30  ;;  %v2614_v10 = vrot.slane %v2613_v51, 1  ;;  %v2520_v12 = vpop.permute.xlu0 %2519 }
 0x5f9   : > { %v2686_v30 = vrot.slane %v4221_v2, 4  ;;  %v2552_v3 = vmul.f32 %v2520_v12, %v4326_v40 }
 0x5fa   : > { %v2627_v55 = vadd.f32 %v2626_v26, %v2625_v53  ;;  %v2618_v44 = vadd.f32 %v2617_v54, %v2616_v62  ;;  %v2630_v6 = vadd.f32 %v2544_v48, %v2543_v22  ;;  %v2615_v45 = vadd.f32 %v2614_v10, %v2613_v51 }
 0x5fb   : > { %v2492_v42 = vpop.permute.xlu1 %2491  ;;  %v2711_v48 = vrot.slane %v4218_v16, 5  ;;  %v2735_v22 = vrot.slane %v4311_v1, 5 }
 0x5fc   : > { %v2628_v63 = vrot.slane %v2627_v55, 1  ;;  %v2619_v25 = vrot.slane %v2618_v44, 2  ;;  %v2631_v49 = vrot.slane %v2630_v6, 4  ;;  %v2545_v50 = vmul.f32 %v2492_v42, %v2344_v47 }
 0x5fe   : > { %v2629_v18 = vadd.f32 %v2628_v63, %v2627_v55  ;;  %v2620_v8 = vadd.f32 %v2619_v25, %v2618_v44  ;;  %v2632_v31 = vadd.f32 %v2631_v49, %v2630_v6  ;;  %v2637_v36 = vadd.f32 %v2546_v35, %v2545_v50 }
 0x5ff   : > { %v2508_v23 = vpop.permute.xlu1 %2507 }
 0x600   : > { %v2669_v58 = vadd.f32 %v2629_v18, %v2615_v45  ;;  %v2633_v38 = vrot.slane %v2632_v31, 2  ;;  %v2638_v60 = vrot.slane %v2637_v36, 4  ;;  %v2549_v17 = vmul.f32 %v2508_v23, %v2348_v43 }
 0x601   : > { %v2621_v24 = vrot.slane %v2620_v8, 1  ;;  %v2712_v23 = vrot.slane %v4218_v16, 6 }
 0x602   : > { %v2702_v47 = vadd.f32 %v2686_v30, %v2669_v58  ;;  %v2634_v11 = vadd.f32 %v2633_v38, %v2632_v31  ;;  %v2639_v4 = vadd.f32 %v2638_v60, %v2637_v36  ;;  %v2651_v52 = vadd.f32 %v2550_v33, %v2549_v17 }
 0x603   : > { %v2500_v5 = vpop.permute.xlu1 %2499  ;;  %v2622_v61 = vadd.f32 %v2621_v24, %v2620_v8  ;;  %v2689_v24 = vrot.slane %v4221_v2, 7 }
 0x604   : > { %v2726_v7 = vmul.f32 %v2710_v9, %v2702_v47  ;;  %v2635_v57 = vrot.slane %v2634_v11, 1  ;;  %v2640_v28 = vrot.slane %v2639_v4, 2  ;;  %v2547_v27 = vmul.f32 %v2500_v5, %v4345_v32 }
 0x605   : > { %v2652_v15 = vrot.slane %v2651_v52, 4 }
 0x606   : > { %v2750_v41 = vadd.f32 %v2734_v21, %v2726_v7  ;;  %v2636_v13 = vadd.f32 %v2635_v57, %v2634_v11  ;;  %v2644_v37 = vadd.f32 %v2548_v39, %v2547_v27  ;;  %v2641_v43 = vadd.f32 %v2640_v28, %v2639_v4 }
 0x607   : > { %v2653_v46 = vadd.f32 %v2652_v15, %v2651_v52  ;;  %v2516_v56 = vpop.permute.xlu1 %2515  ;;  %v2713_v39 = vrot.slane %v4218_v16, 7  ;;  %v2737_v52 = vrot.slane %v4311_v1, 7 }
 0x608   : > { %v2771_v51 = vrot.slane %v2750_v41, 4  ;;  %v2670_v53 = vadd.f32 %v2636_v13, %v2622_v61  ;;  %v2645_v62 = vrot.slane %v2644_v37, 4  ;;  %v2551_v26 = vmul.f32 %v2516_v56, %v4348_v34 }
 0x609   : > { %v2654_v32 = vrot.slane %v2653_v46, 2  ;;  %v2642_v55 = vrot.slane %v2641_v43, 1 }
 0x60a   : > { %v2773_v54 = vsel %vm2772_vm10, %v2771_v51, %v4342_v19  ;;  %v2703_v10 = vadd.f32 %v2687_v0, %v2670_v53  ;;  %v2646_v20 = vadd.f32 %v2645_v62, %v2644_v37  ;;  %v2658_v6 = vadd.f32 %v2552_v3, %v2551_v26 }
 0x60b   : > { %v2655_v44 = vadd.f32 %v2654_v32, %v2653_v46  ;;  %v2643_v49 = vadd.f32 %v2642_v55, %v2641_v43  ;;  %v2688_v19 = vrot.slane %v4221_v2, 6  ;;  %v3540_v3 = vmov (!%p3197_p5), 0.0   ;;  %v3485_v55 = vld [vmem:[%s4463_s15 + $0x10] sm:$0xff] (!%p3197_p5)  }
 0x60c   : > { %v2727_v35 = vmul.f32 %v2711_v48, %v2703_v10  ;;  %v2647_v42 = vrot.slane %v2646_v20, 2  ;;  %v2659_v25 = vrot.slane %v2658_v6, 4  ;;  %3277 = vmatprep.subr.bf16.mxu0 (!%p3197_p5), %v3540_v3  ;;  %v3484_v48 = vld [vmem:[%s4463_s15 + $0x8] sm:$0xff] (!%p3197_p5)   ;;  %3293 = vmatprep.mubr.msk.bf16.mxu0 (!%p3197_p5), %vm3541_vm15, %v3540_v3 }
 0x60d   : > { %v2656_v63 = vrot.slane %v2655_v44, 1 }
 0x60e   : > { %v2751_v40 = vadd.f32 %v2735_v22, %v2727_v35  ;;  %v2648_v45 = vadd.f32 %v2647_v42, %v2646_v20  ;;  %v2660_v18 = vadd.f32 %v2659_v25, %v2658_v6  ;;  %v3488_v6 = vld [vmem:[%s4463_s15 + $0x28] sm:$0xff] (!%p3197_p5)   ;;  %v3489_v35 = vld [vmem:[%s4463_s15 + $0x30] sm:$0xff] (!%p3197_p5)   ;;  %v3490_v42 = vld [vmem:[%s4463_s15 + $0x38] sm:$0xff] (!%p3197_p5)  }
 0x60f   : > { %v2657_v50 = vadd.f32 %v2656_v63, %v2655_v44  ;;  %v3486_v44 = vld [vmem:[%s4463_s15 + $0x18] sm:$0xff] (!%p3197_p5)  }
 0x610   : > { %v2774_v34 = vrot.slane %v2751_v40, 3  ;;  %v2661_v31 = vrot.slane %v2660_v18, 2  ;;  %v2649_v58 = vrot.slane %v2648_v45, 1 }
 0x611   : > { %v2671_v8 = vadd.f32 %v2657_v50, %v2643_v49  ;;  %v3198_v50 = vld [vmem:[%s4461_s13] ss:$0 sm:$0xff] (!%p3197_p5) }
 0x612   : > { %v2776_v36 = vsel %vm2775_vm11, %v2774_v34, %v2773_v54  ;;  %v2662_v38 = vadd.f32 %v2661_v31, %v2660_v18  ;;  %v2650_v21 = vadd.f32 %v2649_v58, %v2648_v45  ;;  %v3199_v18 = vld [vmem:[%s4486_s21] ss:$0 sm:$0xff] (!%p3197_p5) }
 0x613   : > { %v2704_v30 = vadd.f32 %v2688_v19, %v2671_v8  ;;  %v3200_v31 = vld [vmem:[%s4487_s24] ss:$0 sm:$0xff] (!%p3197_p5) }
 0x614   : > { %v2663_v33 = vrot.slane %v2662_v38, 1 }
 0x615   : > { %v2728_v60 = vmul.f32 %v2712_v23, %v2704_v30 }
 0x616   : > { %v2664_v17 = vadd.f32 %v2663_v33, %v2662_v38 }
 0x617   : > { %v2752_v9 = vadd.f32 %v2736_v14, %v2728_v60 }
 0x618   : > { %v2672_v11 = vadd.f32 %v2664_v17, %v2650_v21 }
 0x619   : > { %v2777_v47 = vrot.slane %v2752_v9, 2 }
 0x61a   : > { %v2705_v5 = vadd.f32 %v2689_v24, %v2672_v11 }
 0x61b   : > { %v2779_v4 = vsel %vm2778_vm12, %v2777_v47, %v2776_v36 }
 0x61c   : > { %v2729_v7 = vmul.f32 %v2713_v39, %v2705_v5 }
 0x61d   : > { %2788 = sbr.rel (%p3197_p5) target bundleno = 2438 (0x986), region = 96 }
 0x61e   : > { %v2753_v57 = vadd.f32 %v2737_v52, %v2729_v7 }
 0x620   : > { %v2780_v28 = vrot.slane %v2753_v57, 1 }
 0x622   : > { %v2782_v27 = vsel %vm2781_vm13, %v2780_v28, %v2779_v4 }
 0x623   : > { %2784 = vst [vmem:[#allocation2] sm:$0xff] %v2782_v27 }
 0x62a   : > { %v2789_v15 = vld [vmem:[#allocation2] sm:$0xff] }
 0x62b   : > { %v2791_v12 = vcombine.high %v2789_v15, %v2789_v15  ;;  %v2798_v2 = vrot.slane %v2789_v15, %v3836_v59 }
 0x62d   : > { %v2805_v41 = vrot.slane %v2791_v12, %v3836_v59  ;;  %v2806_v16 = vcombine.high %v2798_v2, %v2798_v2  ;;  %v2813_v1 = vsel %vm2812_vm14, %v2798_v2, 0.0  ;;  %v3483_v59 = vld [vmem:[%s4463_s15] sm:$0xff]  }
 0x62e   : > { %3278 = vmatpush3.bf16.msra.mxu0 %v3483_v59 }
 0x62f   : > { %v2807_v61 = vcombine.high %v2805_v41, %v2805_v41  ;;  %v2814_v13 = vsel %vm2812_vm14, %v2806_v16, 0.0  ;;  %v2816_v37 = vsel %vm2812_vm14, %v2805_v41, 0.0  ;;  %3279 = vmatprep.subr.bf16.mxu0 %v3540_v3 }
 0x630   : > { %v2815_v43 = vadd.f32 %v2814_v13, %v2813_v1 }
 0x631   : > { %v2818_v46 = vsel %vm2812_vm14, %v2807_v61, 0.0 }
 0x632   : > { %v2817_v56 = vadd.f32 %v2816_v37, %v2815_v43  ;;  %3280 = vmatpush3.bf16.msra.mxu0 %v3484_v48 }
 0x633   : > { %3281 = vmatprep.subr.bf16.mxu0 %v3540_v3 }
 0x634   : > { %v2819_v51 = vadd.f32 %v2818_v46, %v2817_v56 }
 0x636   : > { %v2821_v0 = vmul.f32 0.25, %v2819_v51  ;;  %3282 = vmatpush3.bf16.msra.mxu0 %v3485_v55 }
 0x637   : > { %3283 = vmatprep.subr.bf16.mxu0 %v3540_v3 }
 0x638   : > { %v2824_v53 = vsel %vm875_vm0, %v2821_v0, 0.0 }
 0x639   : > { %v2825_v62 = vsel %vm2812_vm14, %v2824_v53, 0.0 }
 0x63a   : > { %2826 = vadd.xlane.f32.xlu0 %v2825_v62  ;;  %3284 = vmatpush3.bf16.msra.mxu0 %v3486_v44 }
 0x63b   : > { %3285 = vmatprep.subr.bf16.mxu0 %v3540_v3 }
 0x63e   : > { %3286 = vmatpush3.bf16.msra.mxu0 %v3487_v29 }
 0x63f   : > { %3287 = vmatprep.subr.bf16.mxu0 %v3540_v3 }
 0x642   : > { %3288 = vmatpush3.bf16.msra.mxu0 %v3488_v6 }
 0x643   : > { %3289 = vmatprep.subr.bf16.mxu0 %v3540_v3 }
 0x646   : > { %3290 = vmatpush3.bf16.msra.mxu0 %v3489_v35 }
 0x647   : > { %3291 = vmatprep.subr.bf16.mxu0 %v3540_v3 }
 0x64a   : > { %3292 = vmatpush3.bf16.msra.mxu0 %v3490_v42 }
 0x6c7   : > { %v2827_v32 = vpop.xlane.xlu0 %2826 }
 0x6c8   : > { %v2828_v26 = vmul.f32 0.03125, %v2827_v32 }
 0x6ca   : > { %v2829_v54 = vsub.f32 %v2821_v0, %v2828_v26 }
 0x6cc   : > { %v2830_v22 = vsel %vm875_vm0, %v2829_v54, 0.0 }
 0x6cd   : > { %v2831_v10 = vmul.f32 %v2830_v22, %v2830_v22 }
 0x6cf   : > { %v2832_v20 = vsel %vm2812_vm14, %v2831_v10, 0.0 }
 0x6d0   : > { %2833 = vadd.xlane.f32.xlu0 %v2832_v20 }
 0x75d   : > { %v2834_v63 = vpop.xlane.xlu0 %2833 }
 0x75e   : > { %v2835_v25 = vmul.f32 0.03125, %v2834_v63 }
 0x760   : > { %v2836_v40 = vadd.f32 1e-05, %v2835_v25 }
 0x762   : > { %3491 = vrsqrt.f32 %v2836_v40 }
 0x76c   : > { %v3492_v49 = vpop.eup %3491 }
 0x76d   : > { %v2838_v45 = vmul.f32 %v3492_v49, %v2830_v22 }
 0x76f   : > { %v2845_v34 = vmul.f32 %v3198_v50, %v2838_v45 }
 0x771   : > { %v2852_v19 = vadd.f32 %v3199_v18, %v2845_v34 }
 0x773   : > { %v2853_v8 = vpack.c.bf16 %v2852_v19, %v2852_v19 }
 0x775   : > { %3294 = vmatmul.mubr.bf16.vlgmr.msra.gmra.mrb[0].mxu0 %v2853_v8 }
 0x848   : > { %v2959_v36 = vpop.f32.mrb[0].mxu0 }
 0x849   : > { %v2960_v23 = vadd.f32 %v3200_v31, %v2959_v36  ;;  %v3295_v14 = vpop.f32.mrb[1].mxu0 }
 0x84a   : > { %v2962_v30 = vpop.f32.mrb[2].mxu0 }
 0x84b   : > { %v3296_v58 = vpop.f32.mrb[3].mxu0  ;;  %v2965_v38 = vsel %vm2812_vm14, %v2960_v23, -inf }
 0x84c   : > { %2966 = vmax.xlane.f32.xlu1 %v2965_v38 }
 0x8d9   : > { %v2967_v60 = vpop.xlane.xlu1 %2966 }
 0x8da   : > { %v2968_v33 = vsub.f32 %v2960_v23, %v2967_v60 }
 0x8dc   : > { %v2969_v9 = vmul.f32 1.442695, %v2968_v33 }
 0x8de   : > { %3493 = vpow2.f32 %v2969_v9 }
 0x8e8   : > { %v3494_v21 = vpop.eup %3493 }
 0x8e9   : > { %v2971_v17 = vsel %vm2812_vm14, %v3494_v21, 0.0 }
 0x8ea   : > { %2972 = vadd.xlane.f32.xlu1 %v2971_v17 }
 0x977   : > { %v2973_v47 = vpop.xlane.xlu1 %2972 }
 0x978   : > { %3495 = vrcp.f32 %v2973_v47 }
 0x982   : > { %v3496_v24 = vpop.eup %3495 }
 0x983   : > { %v2975_v11 = vmul.f32 %v3496_v24, %v3494_v21 }
 0x985   : > { %2976 = vst [vmem:[#allocation6] sm:$0x3] %v2975_v11 }
 0x986 PF: > { %p3301_p6 = scmp.eq.s32.totalorder %s3639_s25, 1  ;;  %s3542_s14 = smov [#allocation6]  }
 0x987   : > { %s2984_s18 = sshll.u32 %s3542_s14, 4  ;;  %s2985_s18 = int_to_ptr.vmem [resolvable:$true] %s2984_s18 }
 0x988   : > { %s3497_s28 = scalar_lea.vmem %s2985_s18, 32  ;;  %p3504_p10 = scmp.lt.s32.totalorder %s2985_s18, %s2985_s18 }
 0x989   : > { %p3498_p7 = scmp.ne.s32.totalorder %s2985_s18, %s3497_s28  ;;  %p3505_p11 = scmp.lt.s32.totalorder %s3497_s28, %s3497_s28 }
 0x98b   : > { %p3499_p8 = pnand %p3498_p7, %p3301_p6  ;;  %p3506_p12 = por %p3505_p11, %p3504_p10 }
 0x98d   : > { %p3500_p9 = pneg %p3499_p8 }
 0x98f   : > { %p3507_p13 = pnand %p3506_p12, %p3500_p9 }
 0x991   : > { %3510 = shalt.err (!%p3507_p13)
}
 0x992   : > { %s4488_s19 = sld [smem:[#allocation16_spill]] }
 0x998   : > { %s3511_s17 = scalar_lea.hbm %s4488_s19, 32 }
 0x999   : > { %p3512_p0 = scmp.ne.s32.totalorder %s4488_s19, %s3511_s17  ;;  %p3517_p3 = scmp.lt.u32.totalorder %s3511_s17, %s4488_s19 }
 0x99b   : > { %p3513_p1 = pnand %p3512_p0, %p3301_p6 }
 0x99d   : > { %p3514_p2 = pneg %p3513_p1 }
 0x99f   : > { %p3519_p4 = pnand %p3517_p3, %p3514_p2 }
 0x9a1   : > { %3522 = shalt.err (!%p3519_p4)
}
 0x9a2   : > { %3298 = dma.vmem_to_hbm [thread:$0]  (%p3301_p6), %s2985_s18, 32, %s4488_s19, [#allocation7]  }
 0x9a3   : > { %3528 = dma.done.wait (%p3301_p6), [#allocation7], 32  }
 0x9a4   : > { %3530 = vsyncadd (%p3301_p6), [#allocation7], 4294967264 }
 0x9a5 PF: > { %s4489_s21 = sld [smem:[#allocation9_spill]] }
 0x9ab   : > { %s28_s24 = sadd.s32 1, %s4489_s21  }
 0x9ac   : > { %p25_p5 = scmp.ge.s32.totalorder %s28_s24, 4  }
 0x9ae   :  { %27 = sbr.rel (!%p25_p5) target bundleno = 9 (0x9), region = 159 }
 0x9b5   :  { %2997 = vsyncpa [#allocation7], 1 }
 0x9b6   :  { %2999 = vsyncpa [#allocation7 + $0x1], 1 }

</bundles_post_ra>
